<compile_context>
chip_gen: v7x
topology: tpu7x:2x2x1
jax: 0.10.0
libtpu: 0.0.40
codegen_flags: <defaults>
</compile_context>

<pallas_src>
import numpy as np
import jax
import jax.numpy as jnp
from jax import lax
from jax.experimental import pallas as pl
from jax.experimental.pallas import tpu as pltpu


# ------------------------------ fused forward kernel --------------------------
def _fused_forward_kernel(x_ref, adj_ref, wih13_ref, whh13_ref, bi13_ref, bhn13_ref,
                          wih2_ref, whh2_ref, bi2_ref, bhn2_ref,
                          theta1_ref, theta2_ref, fcw1_ref, fcw2_ref, fcw3_ref, fcb_ref,
                          out_ref):
    # x_ref: (T, V, Cin) time-major slab for ONE batch element.
    T, V, Cin = x_ref.shape
    H2 = whh13_ref.shape[0]          # 2 * hidden_size (gru1 + gru3 fused, block-diagonal)
    H = whh2_ref.shape[0]            # hidden_size (gru2)

    # Hoist all weight/bias loads out of the serial time loop (loaded once per block).
    adj = adj_ref[...]
    wih13 = wih13_ref[...]
    whh13 = whh13_ref[...]
    bi13 = bi13_ref[...]
    bhn13 = bhn13_ref[...]
    wih2 = wih2_ref[...]
    whh2 = whh2_ref[...]
    bi2 = bi2_ref[...]
    bhn2 = bhn2_ref[...]
    theta2 = theta2_ref[...]

    def gru_cell(g_in, g_h, h, Ht, bhn):
        # PyTorch GRU equations; b_ir+b_hr and b_iz+b_hz are pre-folded into g_in,
        # only b_hn must stay inside the r*(...) term.
        rz = jax.nn.sigmoid(g_in[:, :2 * Ht] + g_h[:, :2 * Ht])
        r = rz[:, :Ht]
        z = rz[:, Ht:]
        n = jnp.tanh(g_in[:, 2 * Ht:] + r * (g_h[:, 2 * Ht:] + bhn))
        return (1.0 - z) * n + z * h

    def step(t, carry):
        h13, h2 = carry
        xt = x_ref[t]                                                          # (V, Cin)

        # --- GCN(t) for the gcn_gru branch (A @ x_t, Theta, ReLU), all in registers ---
        ax = jnp.dot(adj, xt, preferred_element_type=jnp.float32)              # (V, Cin)
        gcn_t = jnp.maximum(
            jnp.dot(ax, theta2, preferred_element_type=jnp.float32), 0.0)      # (V, Cout)

        # --- fused gru1 (gru_gcn.gru) + gru3 (gru_unit.gru): shared input x_t ---
        gi13 = jnp.dot(xt, wih13, preferred_element_type=jnp.float32) + bi13   # (V, 3*H2)
        gh13 = jnp.dot(h13, whh13, preferred_element_type=jnp.float32)
        h13 = gru_cell(gi13, gh13, h13, H2, bhn13)

        # --- gru2 (gcn_gru.gru) step on the GCN output of this timestep ---
        gi2 = jnp.dot(gcn_t, wih2, preferred_element_type=jnp.float32) + bi2   # (V, 3*H)
        gh2 = jnp.dot(h2, whh2, preferred_element_type=jnp.float32)
        h2 = gru_cell(gi2, gh2, h2, H, bhn2)
        return h13, h2

    h13_0 = jnp.zeros((V, H2), jnp.float32)
    h2_0 = jnp.zeros((V, H), jnp.float32)
    unroll = True if T <= 32 else 4
    h13, h2 = lax.fori_loop(0, T, step, (h13_0, h2_0), unroll=unroll)

    Hh = H2 // 2
    h1 = h13[:, :Hh]            # gru_gcn.gru final hidden state
    gru_out = h13[:, Hh:]       # gru_unit branch output
    gcn_gru_out = h2            # gcn_gru branch output

    # --- gru_gcn branch: GCN on the final hidden only (reference discards the rest) ---
    ah = jnp.dot(adj, h1, preferred_element_type=jnp.float32)                  # (V, H)
    gru_gcn_out = jnp.maximum(
        jnp.dot(ah, theta1_ref[...], preferred_element_type=jnp.float32), 0.0)  # (V, Cout)

    # TODO(synk): self.att = GCN(att_input_size=..., att_out_size=...) is not a valid GCN
    # construction in the reference (TypeError at init); treated as identity here.

    # --- fused concat + fc1 + fc2: three row-block matmuls into one 2*Osz-wide slab ---
    out_ref[...] = (
        jnp.dot(gru_gcn_out, fcw1_ref[...], preferred_element_type=jnp.float32)
        + jnp.dot(gcn_gru_out, fcw2_ref[...], preferred_element_type=jnp.float32)
        + jnp.dot(gru_out, fcw3_ref[...], preferred_element_type=jnp.float32)
        + fcb_ref[...]
    )


# --------------------- host-side weight packing (outside jit) ------------------
def pack_params(p):
    """Pack PyTorch-layout params once at parameter-prep time (numpy, no XLA ops).

    * gru1 (gru_gcn.gru) and gru3 (gru_unit.gru) consume the same sequence -> fused
      into one scan with block-diagonal recurrent weights (hidden width 2H).
    * b_hr / b_hz are folded into the input-side bias; b_hn is kept separate.
    * Theta / fc weights are pre-transposed; fc1/fc2 are concatenated and split into
      the three row blocks that multiply [gru_gcn_out | gcn_gru_out | gru_out].
    """
    H = int(p["gru1"][1].shape[1])
    Cout = int(p["gcn1_theta"].shape[0])
    Osz = int(p["fc1_w"].shape[0])
    assert Cout == H, "concat path requires out_channels == hidden_size"

    def to_np(a):
        return np.asarray(a, dtype=np.float32)

    def fuse_grus(gru_list):
        k = len(gru_list)
        Cin = int(gru_list[0][0].shape[1])
        Ht = k * H
        W_ih = np.zeros((Cin, 3 * Ht), np.float32)
        W_hh = np.zeros((Ht, 3 * Ht), np.float32)
        b_i = np.zeros((3 * Ht,), np.float32)
        b_hn = np.zeros((Ht,), np.float32)
        for j, (w_ih, w_hh, b_ih, b_hh) in enumerate(gru_list):
            w_ih, w_hh, b_ih, b_hh = map(to_np, (w_ih, w_hh, b_ih, b_hh))
            for g in range(3):                      # PyTorch gate order: r, z, n
                col = g * Ht + j * H
                W_ih[:, col:col + H] = w_ih[g * H:(g + 1) * H, :].T
                W_hh[j * H:(j + 1) * H, col:col + H] = w_hh[g * H:(g + 1) * H, :].T
                b_i[col:col + H] = b_ih[g * H:(g + 1) * H]
                if g < 2:                           # fold b_hr / b_hz (NOT b_hn)
                    b_i[col:col + H] += b_hh[g * H:(g + 1) * H]
            b_hn[j * H:(j + 1) * H] = b_hh[2 * H:3 * H]
        return W_ih, W_hh, b_i.reshape(1, -1), b_hn.reshape(1, -1)

    wih13, whh13, bi13, bhn13 = fuse_grus([p["gru1"], p["gru3"]])
    wih2, whh2, bi2, bhn2 = fuse_grus([p["gru2"]])

    fc_w = np.concatenate([to_np(p["fc1_w"]).T, to_np(p["fc2_w"]).T], axis=1)  # (3H, 2*Osz)
    fc_b = np.concatenate([to_np(p["fc1_b"]), to_np(p["fc2_b"])]).reshape(1, -1)

    packed = dict(
        adj=to_np(p["adj"]),
        wih13=wih13, whh13=whh13, bi13=bi13, bhn13=bhn13,
        wih2=wih2, whh2=whh2, bi2=bi2, bhn2=bhn2,
        theta1=to_np(p["gcn1_theta"]).T,      # (H, Cout)   gru_gcn.sa_gcn.Theta
        theta2=to_np(p["gcn2_theta"]).T,      # (Cin, Cout) gcn_gru.sa_gcn.Theta
        fcw1=fc_w[:Cout],                     # multiplies gru_gcn_out
        fcw2=fc_w[Cout:Cout + H],             # multiplies gcn_gru_out
        fcw3=fc_w[Cout + H:],                 # multiplies gru_out
        fcb=fc_b,                             # (1, 2*Osz)
    )
    return {k: jnp.asarray(v) for k, v in packed.items()}


# ------------------------------- full forward ----------------------------------
def paralle_st_gcn_t_forward(x, pk):
    B, V, T, Cin = x.shape
    Osz2 = pk["fcb"].shape[1]

    # One tiny relayout of the INPUT (a few KB) to time-major per batch element;
    # no intermediate activation ever leaves VMEM after this.
    x_bt = jnp.transpose(x, (0, 2, 1, 3))            # (B, T, V, Cin)

    weights = [pk["adj"], pk["wih13"], pk["whh13"], pk["bi13"], pk["bhn13"],
               pk["wih2"], pk["whh2"], pk["bi2"], pk["bhn2"],
               pk["theta1"], pk["theta2"], pk["fcw1"], pk["fcw2"], pk["fcw3"], pk["fcb"]]
    w_specs = [pl.BlockSpec(w.shape, lambda b, _nd=w.ndim: (0,) * _nd) for w in weights]

    out = pl.pallas_call(
        _fused_forward_kernel,
        out_shape=jax.ShapeDtypeStruct((B, V, Osz2), jnp.float32),
        grid=(B,),
        in_specs=[pl.BlockSpec((None, T, V, Cin), lambda b: (b, 0, 0, 0))] + w_specs,
        out_specs=pl.BlockSpec((None, V, Osz2), lambda b: (b, 0, 0)),
        compiler_params=pltpu.CompilerParams(dimension_semantics=("parallel",)),
    )(x_bt, *weights)

    out = out.reshape(B * V, Osz2)
    Osz = Osz2 // 2
    return out[:, :Osz], out[:, Osz:]


# ------------------------ pure-JAX reference (for checking) --------------------
def _gru_ref(x_seq, w_ih, w_hh, b_ih, b_hh):
    """PyTorch nn.GRU (1 layer, batch_first, h0=0) final hidden.  x_seq: (N, T, C)."""
    Hh = w_hh.shape[1]

    def cell(h, xt):
        gi = xt @ w_ih.T + b_ih
        gh = h @ w_hh.T + b_hh
        r = jax.nn.sigmoid(gi[:, :Hh] + gh[:, :Hh])
        z = jax.nn.sigmoid(gi[:, Hh:2 * Hh] + gh[:, Hh:2 * Hh])
        n = jnp.tanh(gi[:, 2 * Hh:] + r * gh[:, 2 * Hh:])
        return (1.0 - z) * n + z * h, None

    h0 = jnp.zeros((x_seq.shape[0], Hh), jnp.float32)
    h, _ = lax.scan(cell, h0, jnp.transpose(x_seq, (1, 0, 2)))
    return h


def _gcn_ref(adj, theta_w, x):
    ax = jnp.einsum('vw,bwtc->bvtc', adj, x)
    return jax.nn.relu(jnp.einsum('bvtc,oc->bvto', ax, theta_w))


def reference_forward(x, p):
    B, V, T, Cin = x.shape
    H = p["gru1"][1].shape[1]
    x_flat = x.reshape(B * V, T, Cin)

    h1 = _gru_ref(x_flat, *p["gru1"])                                    # (B*V, H)
    g1 = _gcn_ref(p["adj"], p["gcn1_theta"], h1.reshape(B, V, 1, H))     # (B, V, 1, Cout)
    gru_gcn_out = g1[:, :, 0, :].reshape(B * V, -1)

    g2 = _gcn_ref(p["adj"], p["gcn2_theta"], x)                          # (B, V, T, Cout)
    gcn_gru_out = _gru_ref(g2.reshape(B * V, T, -1), *p["gru2"])         # (B*V, H)

    gru_out = _gru_ref(x_flat, *p["gru3"])                               # (B*V, H)

    concat = jnp.concatenate([gru_gcn_out, gcn_gru_out, gru_out], axis=-1)
    o1 = concat @ p["fc1_w"].T + p["fc1_b"]
    o2 = concat @ p["fc2_w"].T + p["fc2_b"]
    return o1, o2


# ------------------------------ parameter init ----------------------------------
def make_params(key, V, Cin, Cout, H, Osz):
    ks = list(jax.random.split(key, 24))

    def nrm(k, shape, scale=0.1):
        return scale * jax.random.normal(k, shape, dtype=jnp.float32)

    # symmetric normalized adjacency  D^-1/2 (A+I) D^-1/2
    a = (jax.random.uniform(ks[0], (V, V)) > 0.5).astype(jnp.float32)
    a = jnp.maximum(a, a.T) + jnp.eye(V, dtype=jnp.float32)
    d = jnp.sum(a, axis=1)
    dinv = 1.0 / jnp.sqrt(d)
    adj = a * dinv[:, None] * dinv[None, :]

    def gru_params(k0, k1, k2, k3, in_dim):
        return (nrm(k0, (3 * H, in_dim)), nrm(k1, (3 * H, H)),
                nrm(k2, (3 * H,)), nrm(k3, (3 * H,)))

    return {
        "adj": adj,
        "gru1": gru_params(ks[1], ks[2], ks[3], ks[4], Cin),      # gru_gcn.gru
        "gcn1_theta": nrm(ks[5], (Cout, H)),                      # gru_gcn.sa_gcn.Theta
        "gcn2_theta": nrm(ks[6], (Cout, Cin)),                    # gcn_gru.sa_gcn.Theta
        "gru2": gru_params(ks[7], ks[8], ks[9], ks[10], Cout),    # gcn_gru.gru
        "gru3": gru_params(ks[11], ks[12], ks[13], ks[14], Cin),  # gru_unit.gru
        "fc1_w": nrm(ks[15], (Osz, 3 * H)),
        "fc1_b": nrm(ks[16], (Osz,)),
        "fc2_w": nrm(ks[17], (Osz, 3 * H)),
        "fc2_b": nrm(ks[18], (Osz,)),
    }


if __name__ == "__main__":
    key = jax.random.PRNGKey(0)
    B, V, T = 2, 8, 8
    Cin, H, Cout, Osz = 4, 16, 16, 8   # out_channels == hidden_size (required by concat)

    kx, kp = jax.random.split(key)
    x = jax.random.normal(kx, (B, V, T, Cin), dtype=jnp.float32)
    params = make_params(kp, V, Cin, Cout, H, Osz)
    packed = pack_params(params)       # one-time host-side weight packing (outside jit)

    fwd = jax.jit(paralle_st_gcn_t_forward)
    out1, out2 = fwd(x, packed)
    jax.block_until_ready((out1, out2))
    assert out1.shape == (B * V, Osz) and out2.shape == (B * V, Osz)

    # pure-JAX reference check (f32 path, tolerance absorbs TPU matmul precision modes)
    ref1, ref2 = reference_forward(x, params)
    err = max(float(jnp.max(jnp.abs(out1 - ref1))), float(jnp.max(jnp.abs(out2 - ref2))))
    assert err < 1e-2, f"max abs error vs reference: {err}"

    print("KERNEL_OK")
</pallas_src>

<mosaic_0001>
module attributes {stable_mosaic.version = 11 : i64} {
  func.func @_fused_forward_kernel(%arg0: i32, %arg1: memref<1x8x8x4xf32, #tpu.memory_space<vmem>>, %arg2: memref<8x8xf32, #tpu.memory_space<vmem>>, %arg3: memref<4x96xf32, #tpu.memory_space<vmem>>, %arg4: memref<32x96xf32, #tpu.memory_space<vmem>>, %arg5: memref<1x96xf32, #tpu.memory_space<vmem>>, %arg6: memref<1x32xf32, #tpu.memory_space<vmem>>, %arg7: memref<16x48xf32, #tpu.memory_space<vmem>>, %arg8: memref<16x48xf32, #tpu.memory_space<vmem>>, %arg9: memref<1x48xf32, #tpu.memory_space<vmem>>, %arg10: memref<1x16xf32, #tpu.memory_space<vmem>>, %arg11: memref<16x16xf32, #tpu.memory_space<vmem>>, %arg12: memref<4x16xf32, #tpu.memory_space<vmem>>, %arg13: memref<16x16xf32, #tpu.memory_space<vmem>>, %arg14: memref<16x16xf32, #tpu.memory_space<vmem>>, %arg15: memref<16x16xf32, #tpu.memory_space<vmem>>, %arg16: memref<1x16xf32, #tpu.memory_space<vmem>>, %arg17: memref<1x8x16xf32, #tpu.memory_space<vmem>>) attributes {dimension_semantics = [#tpu.dimension_semantics<parallel>], iteration_bounds = array<i64: 2>, scalar_prefetch = 0 : i64, scratch_operands = 0 : i64, tpu.core_type = #tpu.core_type<tc>, window_params = [{transform_indices = @transform_0, window_bounds = array<i64: 1, 8, 8, 4>}, {pipeline_mode = #tpu.pipeline_mode<synchronous>, transform_indices = @transform_1, window_bounds = array<i64: 8, 8>}, {pipeline_mode = #tpu.pipeline_mode<synchronous>, transform_indices = @transform_2, window_bounds = array<i64: 4, 96>}, {pipeline_mode = #tpu.pipeline_mode<synchronous>, transform_indices = @transform_3, window_bounds = array<i64: 32, 96>}, {pipeline_mode = #tpu.pipeline_mode<synchronous>, transform_indices = @transform_4, window_bounds = array<i64: 1, 96>}, {pipeline_mode = #tpu.pipeline_mode<synchronous>, transform_indices = @transform_5, window_bounds = array<i64: 1, 32>}, {pipeline_mode = #tpu.pipeline_mode<synchronous>, transform_indices = @transform_6, window_bounds = array<i64: 16, 48>}, {pipeline_mode = #tpu.pipeline_mode<synchronous>, transform_indices = @transform_7, window_bounds = array<i64: 16, 48>}, {pipeline_mode = #tpu.pipeline_mode<synchronous>, transform_indices = @transform_8, window_bounds = array<i64: 1, 48>}, {pipeline_mode = #tpu.pipeline_mode<synchronous>, transform_indices = @transform_9, window_bounds = array<i64: 1, 16>}, {pipeline_mode = #tpu.pipeline_mode<synchronous>, transform_indices = @transform_10, window_bounds = array<i64: 16, 16>}, {pipeline_mode = #tpu.pipeline_mode<synchronous>, transform_indices = @transform_11, window_bounds = array<i64: 4, 16>}, {pipeline_mode = #tpu.pipeline_mode<synchronous>, transform_indices = @transform_12, window_bounds = array<i64: 16, 16>}, {pipeline_mode = #tpu.pipeline_mode<synchronous>, transform_indices = @transform_13, window_bounds = array<i64: 16, 16>}, {pipeline_mode = #tpu.pipeline_mode<synchronous>, transform_indices = @transform_14, window_bounds = array<i64: 16, 16>}, {pipeline_mode = #tpu.pipeline_mode<synchronous>, transform_indices = @transform_15, window_bounds = array<i64: 1, 16>}, {transform_indices = @transform_16, window_bounds = array<i64: 1, 8, 16>}]} {
    %c0 = arith.constant 0 : index
    %c0_0 = arith.constant 0 : index
    %0 = vector.load %arg2[%c0, %c0_0] : memref<8x8xf32, #tpu.memory_space<vmem>>, vector<8x8xf32>
    %c0_1 = arith.constant 0 : index
    %c0_2 = arith.constant 0 : index
    %1 = vector.load %arg3[%c0_1, %c0_2] : memref<4x96xf32, #tpu.memory_space<vmem>>, vector<4x96xf32>
    %c0_3 = arith.constant 0 : index
    %c0_4 = arith.constant 0 : index
    %2 = vector.load %arg4[%c0_3, %c0_4] : memref<32x96xf32, #tpu.memory_space<vmem>>, vector<32x96xf32>
    %c0_5 = arith.constant 0 : index
    %c0_6 = arith.constant 0 : index
    %3 = vector.load %arg5[%c0_5, %c0_6] : memref<1x96xf32, #tpu.memory_space<vmem>>, vector<1x96xf32>
    %c0_7 = arith.constant 0 : index
    %c0_8 = arith.constant 0 : index
    %4 = vector.load %arg6[%c0_7, %c0_8] : memref<1x32xf32, #tpu.memory_space<vmem>>, vector<1x32xf32>
    %c0_9 = arith.constant 0 : index
    %c0_10 = arith.constant 0 : index
    %5 = vector.load %arg7[%c0_9, %c0_10] : memref<16x48xf32, #tpu.memory_space<vmem>>, vector<16x48xf32>
    %c0_11 = arith.constant 0 : index
    %c0_12 = arith.constant 0 : index
    %6 = vector.load %arg8[%c0_11, %c0_12] : memref<16x48xf32, #tpu.memory_space<vmem>>, vector<16x48xf32>
    %c0_13 = arith.constant 0 : index
    %c0_14 = arith.constant 0 : index
    %7 = vector.load %arg9[%c0_13, %c0_14] : memref<1x48xf32, #tpu.memory_space<vmem>>, vector<1x48xf32>
    %c0_15 = arith.constant 0 : index
    %c0_16 = arith.constant 0 : index
    %8 = vector.load %arg10[%c0_15, %c0_16] : memref<1x16xf32, #tpu.memory_space<vmem>>, vector<1x16xf32>
    %c0_17 = arith.constant 0 : index
    %c0_18 = arith.constant 0 : index
    %9 = vector.load %arg12[%c0_17, %c0_18] : memref<4x16xf32, #tpu.memory_space<vmem>>, vector<4x16xf32>
    %cst = arith.constant 0.000000e+00 : f32
    %10 = vector.broadcast %cst : f32 to vector<8x32xf32>
    %cst_19 = arith.constant 0.000000e+00 : f32
    %11 = vector.broadcast %cst_19 : f32 to vector<8x16xf32>
    %c0_i32 = arith.constant 0 : i32
    %c0_20 = arith.constant 0 : index
    %12 = arith.index_cast %c0_i32 : i32 to index
    %c0_21 = arith.constant 0 : index
    %c0_22 = arith.constant 0 : index
    %13 = vector.load %arg1[%c0_20, %12, %c0_21, %c0_22] : memref<1x8x8x4xf32, #tpu.memory_space<vmem>>, vector<1x1x8x4xf32>
    %14 = vector.shape_cast %13 : vector<1x1x8x4xf32> to vector<8x4xf32>
    %cst_23 = arith.constant dense<0.000000e+00> : vector<8x4xf32>
    %15 = tpu.matmul %0, %14, %cst_23 {dimension_numbers = #tpu.dot_dimension_numbers<[1], [0], [0], [1], [0, 0, 1, 1], [], []>} : vector<8x8xf32>, vector<8x4xf32>, vector<8x4xf32> -> vector<8x4xf32>
    %cst_24 = arith.constant dense<0.000000e+00> : vector<8x16xf32>
    %16 = tpu.matmul %15, %9, %cst_24 {dimension_numbers = #tpu.dot_dimension_numbers<[1], [0], [0], [1], [0, 0, 1, 1], [], []>} : vector<8x4xf32>, vector<4x16xf32>, vector<8x16xf32> -> vector<8x16xf32>
    %cst_25 = arith.constant 0.000000e+00 : f32
    %17 = vector.broadcast %cst_25 : f32 to vector<8x16xf32>
    %18 = arith.maximumf %16, %17 : vector<8x16xf32>
    %cst_26 = arith.constant dense<0.000000e+00> : vector<8x96xf32>
    %19 = tpu.matmul %14, %1, %cst_26 {dimension_numbers = #tpu.dot_dimension_numbers<[1], [0], [0], [1], [0, 0, 1, 1], [], []>} : vector<8x4xf32>, vector<4x96xf32>, vector<8x96xf32> -> vector<8x96xf32>
    %20 = vector.broadcast %3 : vector<1x96xf32> to vector<8x96xf32>
    %21 = arith.addf %19, %20 : vector<8x96xf32>
    %cst_27 = arith.constant dense<0.000000e+00> : vector<8x96xf32>
    %22 = tpu.matmul %10, %2, %cst_27 {dimension_numbers = #tpu.dot_dimension_numbers<[1], [0], [0], [1], [0, 0, 1, 1], [], []>} : vector<8x32xf32>, vector<32x96xf32>, vector<8x96xf32> -> vector<8x96xf32>
    %23 = vector.extract_strided_slice %21 {offsets = [0, 0], sizes = [8, 64], strides = [1, 1]} : vector<8x96xf32> to vector<8x64xf32>
    %24 = vector.extract_strided_slice %22 {offsets = [0, 0], sizes = [8, 64], strides = [1, 1]} : vector<8x96xf32> to vector<8x64xf32>
    %25 = arith.addf %23, %24 : vector<8x64xf32>
    %26 = arith.negf %25 : vector<8x64xf32>
    %27 = math.exp %26 : vector<8x64xf32>
    %cst_28 = arith.constant 1.000000e+00 : f32
    %28 = vector.broadcast %cst_28 : f32 to vector<8x64xf32>
    %29 = arith.addf %28, %27 : vector<8x64xf32>
    %30 = arith.divf %28, %29 : vector<8x64xf32>
    %31 = vector.extract_strided_slice %30 {offsets = [0, 0], sizes = [8, 32], strides = [1, 1]} : vector<8x64xf32> to vector<8x32xf32>
    %32 = vector.extract_strided_slice %30 {offsets = [0, 32], sizes = [8, 32], strides = [1, 1]} : vector<8x64xf32> to vector<8x32xf32>
    %33 = vector.extract_strided_slice %21 {offsets = [0, 64], sizes = [8, 32], strides = [1, 1]} : vector<8x96xf32> to vector<8x32xf32>
    %34 = vector.extract_strided_slice %22 {offsets = [0, 64], sizes = [8, 32], strides = [1, 1]} : vector<8x96xf32> to vector<8x32xf32>
    %35 = vector.broadcast %4 : vector<1x32xf32> to vector<8x32xf32>
    %36 = arith.addf %34, %35 : vector<8x32xf32>
    %37 = arith.mulf %31, %36 : vector<8x32xf32>
    %38 = arith.addf %33, %37 : vector<8x32xf32>
    %39 = math.tanh %38 : vector<8x32xf32>
    %cst_29 = arith.constant 1.000000e+00 : f32
    %40 = vector.broadcast %cst_29 : f32 to vector<8x32xf32>
    %41 = arith.subf %40, %32 : vector<8x32xf32>
    %42 = arith.mulf %41, %39 : vector<8x32xf32>
    %43 = arith.mulf %32, %10 : vector<8x32xf32>
    %44 = arith.addf %42, %43 : vector<8x32xf32>
    %cst_30 = arith.constant dense<0.000000e+00> : vector<8x48xf32>
    %45 = tpu.matmul %18, %5, %cst_30 {dimension_numbers = #tpu.dot_dimension_numbers<[1], [0], [0], [1], [0, 0, 1, 1], [], []>} : vector<8x16xf32>, vector<16x48xf32>, vector<8x48xf32> -> vector<8x48xf32>
    %46 = vector.broadcast %7 : vector<1x48xf32> to vector<8x48xf32>
    %47 = arith.addf %45, %46 : vector<8x48xf32>
    %cst_31 = arith.constant dense<0.000000e+00> : vector<8x48xf32>
    %48 = tpu.matmul %11, %6, %cst_31 {dimension_numbers = #tpu.dot_dimension_numbers<[1], [0], [0], [1], [0, 0, 1, 1], [], []>} : vector<8x16xf32>, vector<16x48xf32>, vector<8x48xf32> -> vector<8x48xf32>
    %49 = vector.extract_strided_slice %47 {offsets = [0, 0], sizes = [8, 32], strides = [1, 1]} : vector<8x48xf32> to vector<8x32xf32>
    %50 = vector.extract_strided_slice %48 {offsets = [0, 0], sizes = [8, 32], strides = [1, 1]} : vector<8x48xf32> to vector<8x32xf32>
    %51 = arith.addf %49, %50 : vector<8x32xf32>
    %52 = arith.negf %51 : vector<8x32xf32>
    %53 = math.exp %52 : vector<8x32xf32>
    %cst_32 = arith.constant 1.000000e+00 : f32
    %54 = vector.broadcast %cst_32 : f32 to vector<8x32xf32>
    %55 = arith.addf %54, %53 : vector<8x32xf32>
    %56 = arith.divf %54, %55 : vector<8x32xf32>
    %57 = vector.extract_strided_slice %56 {offsets = [0, 0], sizes = [8, 16], strides = [1, 1]} : vector<8x32xf32> to vector<8x16xf32>
    %58 = vector.extract_strided_slice %56 {offsets = [0, 16], sizes = [8, 16], strides = [1, 1]} : vector<8x32xf32> to vector<8x16xf32>
    %59 = vector.extract_strided_slice %47 {offsets = [0, 32], sizes = [8, 16], strides = [1, 1]} : vector<8x48xf32> to vector<8x16xf32>
    %60 = vector.extract_strided_slice %48 {offsets = [0, 32], sizes = [8, 16], strides = [1, 1]} : vector<8x48xf32> to vector<8x16xf32>
    %61 = vector.broadcast %8 : vector<1x16xf32> to vector<8x16xf32>
    %62 = arith.addf %60, %61 : vector<8x16xf32>
    %63 = arith.mulf %57, %62 : vector<8x16xf32>
    %64 = arith.addf %59, %63 : vector<8x16xf32>
    %65 = math.tanh %64 : vector<8x16xf32>
    %cst_33 = arith.constant 1.000000e+00 : f32
    %66 = vector.broadcast %cst_33 : f32 to vector<8x16xf32>
    %67 = arith.subf %66, %58 : vector<8x16xf32>
    %68 = arith.mulf %67, %65 : vector<8x16xf32>
    %69 = arith.mulf %58, %11 : vector<8x16xf32>
    %70 = arith.addf %68, %69 : vector<8x16xf32>
    %c1_i32 = arith.constant 1 : i32
    %c0_34 = arith.constant 0 : index
    %71 = arith.index_cast %c1_i32 : i32 to index
    %c0_35 = arith.constant 0 : index
    %c0_36 = arith.constant 0 : index
    %72 = vector.load %arg1[%c0_34, %71, %c0_35, %c0_36] : memref<1x8x8x4xf32, #tpu.memory_space<vmem>>, vector<1x1x8x4xf32>
    %73 = vector.shape_cast %72 : vector<1x1x8x4xf32> to vector<8x4xf32>
    %cst_37 = arith.constant dense<0.000000e+00> : vector<8x4xf32>
    %74 = tpu.matmul %0, %73, %cst_37 {dimension_numbers = #tpu.dot_dimension_numbers<[1], [0], [0], [1], [0, 0, 1, 1], [], []>} : vector<8x8xf32>, vector<8x4xf32>, vector<8x4xf32> -> vector<8x4xf32>
    %cst_38 = arith.constant dense<0.000000e+00> : vector<8x16xf32>
    %75 = tpu.matmul %74, %9, %cst_38 {dimension_numbers = #tpu.dot_dimension_numbers<[1], [0], [0], [1], [0, 0, 1, 1], [], []>} : vector<8x4xf32>, vector<4x16xf32>, vector<8x16xf32> -> vector<8x16xf32>
    %cst_39 = arith.constant 0.000000e+00 : f32
    %76 = vector.broadcast %cst_39 : f32 to vector<8x16xf32>
    %77 = arith.maximumf %75, %76 : vector<8x16xf32>
    %cst_40 = arith.constant dense<0.000000e+00> : vector<8x96xf32>
    %78 = tpu.matmul %73, %1, %cst_40 {dimension_numbers = #tpu.dot_dimension_numbers<[1], [0], [0], [1], [0, 0, 1, 1], [], []>} : vector<8x4xf32>, vector<4x96xf32>, vector<8x96xf32> -> vector<8x96xf32>
    %79 = vector.broadcast %3 : vector<1x96xf32> to vector<8x96xf32>
    %80 = arith.addf %78, %79 : vector<8x96xf32>
    %cst_41 = arith.constant dense<0.000000e+00> : vector<8x96xf32>
    %81 = tpu.matmul %44, %2, %cst_41 {dimension_numbers = #tpu.dot_dimension_numbers<[1], [0], [0], [1], [0, 0, 1, 1], [], []>} : vector<8x32xf32>, vector<32x96xf32>, vector<8x96xf32> -> vector<8x96xf32>
    %82 = vector.extract_strided_slice %80 {offsets = [0, 0], sizes = [8, 64], strides = [1, 1]} : vector<8x96xf32> to vector<8x64xf32>
    %83 = vector.extract_strided_slice %81 {offsets = [0, 0], sizes = [8, 64], strides = [1, 1]} : vector<8x96xf32> to vector<8x64xf32>
    %84 = arith.addf %82, %83 : vector<8x64xf32>
    %85 = arith.negf %84 : vector<8x64xf32>
    %86 = math.exp %85 : vector<8x64xf32>
    %cst_42 = arith.constant 1.000000e+00 : f32
    %87 = vector.broadcast %cst_42 : f32 to vector<8x64xf32>
    %88 = arith.addf %87, %86 : vector<8x64xf32>
    %89 = arith.divf %87, %88 : vector<8x64xf32>
    %90 = vector.extract_strided_slice %89 {offsets = [0, 0], sizes = [8, 32], strides = [1, 1]} : vector<8x64xf32> to vector<8x32xf32>
    %91 = vector.extract_strided_slice %89 {offsets = [0, 32], sizes = [8, 32], strides = [1, 1]} : vector<8x64xf32> to vector<8x32xf32>
    %92 = vector.extract_strided_slice %80 {offsets = [0, 64], sizes = [8, 32], strides = [1, 1]} : vector<8x96xf32> to vector<8x32xf32>
    %93 = vector.extract_strided_slice %81 {offsets = [0, 64], sizes = [8, 32], strides = [1, 1]} : vector<8x96xf32> to vector<8x32xf32>
    %94 = vector.broadcast %4 : vector<1x32xf32> to vector<8x32xf32>
    %95 = arith.addf %93, %94 : vector<8x32xf32>
    %96 = arith.mulf %90, %95 : vector<8x32xf32>
    %97 = arith.addf %92, %96 : vector<8x32xf32>
    %98 = math.tanh %97 : vector<8x32xf32>
    %cst_43 = arith.constant 1.000000e+00 : f32
    %99 = vector.broadcast %cst_43 : f32 to vector<8x32xf32>
    %100 = arith.subf %99, %91 : vector<8x32xf32>
    %101 = arith.mulf %100, %98 : vector<8x32xf32>
    %102 = arith.mulf %91, %44 : vector<8x32xf32>
    %103 = arith.addf %101, %102 : vector<8x32xf32>
    %cst_44 = arith.constant dense<0.000000e+00> : vector<8x48xf32>
    %104 = tpu.matmul %77, %5, %cst_44 {dimension_numbers = #tpu.dot_dimension_numbers<[1], [0], [0], [1], [0, 0, 1, 1], [], []>} : vector<8x16xf32>, vector<16x48xf32>, vector<8x48xf32> -> vector<8x48xf32>
    %105 = vector.broadcast %7 : vector<1x48xf32> to vector<8x48xf32>
    %106 = arith.addf %104, %105 : vector<8x48xf32>
    %cst_45 = arith.constant dense<0.000000e+00> : vector<8x48xf32>
    %107 = tpu.matmul %70, %6, %cst_45 {dimension_numbers = #tpu.dot_dimension_numbers<[1], [0], [0], [1], [0, 0, 1, 1], [], []>} : vector<8x16xf32>, vector<16x48xf32>, vector<8x48xf32> -> vector<8x48xf32>
    %108 = vector.extract_strided_slice %106 {offsets = [0, 0], sizes = [8, 32], strides = [1, 1]} : vector<8x48xf32> to vector<8x32xf32>
    %109 = vector.extract_strided_slice %107 {offsets = [0, 0], sizes = [8, 32], strides = [1, 1]} : vector<8x48xf32> to vector<8x32xf32>
    %110 = arith.addf %108, %109 : vector<8x32xf32>
    %111 = arith.negf %110 : vector<8x32xf32>
    %112 = math.exp %111 : vector<8x32xf32>
    %cst_46 = arith.constant 1.000000e+00 : f32
    %113 = vector.broadcast %cst_46 : f32 to vector<8x32xf32>
    %114 = arith.addf %113, %112 : vector<8x32xf32>
    %115 = arith.divf %113, %114 : vector<8x32xf32>
    %116 = vector.extract_strided_slice %115 {offsets = [0, 0], sizes = [8, 16], strides = [1, 1]} : vector<8x32xf32> to vector<8x16xf32>
    %117 = vector.extract_strided_slice %115 {offsets = [0, 16], sizes = [8, 16], strides = [1, 1]} : vector<8x32xf32> to vector<8x16xf32>
    %118 = vector.extract_strided_slice %106 {offsets = [0, 32], sizes = [8, 16], strides = [1, 1]} : vector<8x48xf32> to vector<8x16xf32>
    %119 = vector.extract_strided_slice %107 {offsets = [0, 32], sizes = [8, 16], strides = [1, 1]} : vector<8x48xf32> to vector<8x16xf32>
    %120 = vector.broadcast %8 : vector<1x16xf32> to vector<8x16xf32>
    %121 = arith.addf %119, %120 : vector<8x16xf32>
    %122 = arith.mulf %116, %121 : vector<8x16xf32>
    %123 = arith.addf %118, %122 : vector<8x16xf32>
    %124 = math.tanh %123 : vector<8x16xf32>
    %cst_47 = arith.constant 1.000000e+00 : f32
    %125 = vector.broadcast %cst_47 : f32 to vector<8x16xf32>
    %126 = arith.subf %125, %117 : vector<8x16xf32>
    %127 = arith.mulf %126, %124 : vector<8x16xf32>
    %128 = arith.mulf %117, %70 : vector<8x16xf32>
    %129 = arith.addf %127, %128 : vector<8x16xf32>
    %c2_i32 = arith.constant 2 : i32
    %c0_48 = arith.constant 0 : index
    %130 = arith.index_cast %c2_i32 : i32 to index
    %c0_49 = arith.constant 0 : index
    %c0_50 = arith.constant 0 : index
    %131 = vector.load %arg1[%c0_48, %130, %c0_49, %c0_50] : memref<1x8x8x4xf32, #tpu.memory_space<vmem>>, vector<1x1x8x4xf32>
    %132 = vector.shape_cast %131 : vector<1x1x8x4xf32> to vector<8x4xf32>
    %cst_51 = arith.constant dense<0.000000e+00> : vector<8x4xf32>
    %133 = tpu.matmul %0, %132, %cst_51 {dimension_numbers = #tpu.dot_dimension_numbers<[1], [0], [0], [1], [0, 0, 1, 1], [], []>} : vector<8x8xf32>, vector<8x4xf32>, vector<8x4xf32> -> vector<8x4xf32>
    %cst_52 = arith.constant dense<0.000000e+00> : vector<8x16xf32>
    %134 = tpu.matmul %133, %9, %cst_52 {dimension_numbers = #tpu.dot_dimension_numbers<[1], [0], [0], [1], [0, 0, 1, 1], [], []>} : vector<8x4xf32>, vector<4x16xf32>, vector<8x16xf32> -> vector<8x16xf32>
    %cst_53 = arith.constant 0.000000e+00 : f32
    %135 = vector.broadcast %cst_53 : f32 to vector<8x16xf32>
    %136 = arith.maximumf %134, %135 : vector<8x16xf32>
    %cst_54 = arith.constant dense<0.000000e+00> : vector<8x96xf32>
    %137 = tpu.matmul %132, %1, %cst_54 {dimension_numbers = #tpu.dot_dimension_numbers<[1], [0], [0], [1], [0, 0, 1, 1], [], []>} : vector<8x4xf32>, vector<4x96xf32>, vector<8x96xf32> -> vector<8x96xf32>
    %138 = vector.broadcast %3 : vector<1x96xf32> to vector<8x96xf32>
    %139 = arith.addf %137, %138 : vector<8x96xf32>
    %cst_55 = arith.constant dense<0.000000e+00> : vector<8x96xf32>
    %140 = tpu.matmul %103, %2, %cst_55 {dimension_numbers = #tpu.dot_dimension_numbers<[1], [0], [0], [1], [0, 0, 1, 1], [], []>} : vector<8x32xf32>, vector<32x96xf32>, vector<8x96xf32> -> vector<8x96xf32>
    %141 = vector.extract_strided_slice %139 {offsets = [0, 0], sizes = [8, 64], strides = [1, 1]} : vector<8x96xf32> to vector<8x64xf32>
    %142 = vector.extract_strided_slice %140 {offsets = [0, 0], sizes = [8, 64], strides = [1, 1]} : vector<8x96xf32> to vector<8x64xf32>
    %143 = arith.addf %141, %142 : vector<8x64xf32>
    %144 = arith.negf %143 : vector<8x64xf32>
    %145 = math.exp %144 : vector<8x64xf32>
    %cst_56 = arith.constant 1.000000e+00 : f32
    %146 = vector.broadcast %cst_56 : f32 to vector<8x64xf32>
    %147 = arith.addf %146, %145 : vector<8x64xf32>
    %148 = arith.divf %146, %147 : vector<8x64xf32>
    %149 = vector.extract_strided_slice %148 {offsets = [0, 0], sizes = [8, 32], strides = [1, 1]} : vector<8x64xf32> to vector<8x32xf32>
    %150 = vector.extract_strided_slice %148 {offsets = [0, 32], sizes = [8, 32], strides = [1, 1]} : vector<8x64xf32> to vector<8x32xf32>
    %151 = vector.extract_strided_slice %139 {offsets = [0, 64], sizes = [8, 32], strides = [1, 1]} : vector<8x96xf32> to vector<8x32xf32>
    %152 = vector.extract_strided_slice %140 {offsets = [0, 64], sizes = [8, 32], strides = [1, 1]} : vector<8x96xf32> to vector<8x32xf32>
    %153 = vector.broadcast %4 : vector<1x32xf32> to vector<8x32xf32>
    %154 = arith.addf %152, %153 : vector<8x32xf32>
    %155 = arith.mulf %149, %154 : vector<8x32xf32>
    %156 = arith.addf %151, %155 : vector<8x32xf32>
    %157 = math.tanh %156 : vector<8x32xf32>
    %cst_57 = arith.constant 1.000000e+00 : f32
    %158 = vector.broadcast %cst_57 : f32 to vector<8x32xf32>
    %159 = arith.subf %158, %150 : vector<8x32xf32>
    %160 = arith.mulf %159, %157 : vector<8x32xf32>
    %161 = arith.mulf %150, %103 : vector<8x32xf32>
    %162 = arith.addf %160, %161 : vector<8x32xf32>
    %cst_58 = arith.constant dense<0.000000e+00> : vector<8x48xf32>
    %163 = tpu.matmul %136, %5, %cst_58 {dimension_numbers = #tpu.dot_dimension_numbers<[1], [0], [0], [1], [0, 0, 1, 1], [], []>} : vector<8x16xf32>, vector<16x48xf32>, vector<8x48xf32> -> vector<8x48xf32>
    %164 = vector.broadcast %7 : vector<1x48xf32> to vector<8x48xf32>
    %165 = arith.addf %163, %164 : vector<8x48xf32>
    %cst_59 = arith.constant dense<0.000000e+00> : vector<8x48xf32>
    %166 = tpu.matmul %129, %6, %cst_59 {dimension_numbers = #tpu.dot_dimension_numbers<[1], [0], [0], [1], [0, 0, 1, 1], [], []>} : vector<8x16xf32>, vector<16x48xf32>, vector<8x48xf32> -> vector<8x48xf32>
    %167 = vector.extract_strided_slice %165 {offsets = [0, 0], sizes = [8, 32], strides = [1, 1]} : vector<8x48xf32> to vector<8x32xf32>
    %168 = vector.extract_strided_slice %166 {offsets = [0, 0], sizes = [8, 32], strides = [1, 1]} : vector<8x48xf32> to vector<8x32xf32>
    %169 = arith.addf %167, %168 : vector<8x32xf32>
    %170 = arith.negf %169 : vector<8x32xf32>
    %171 = math.exp %170 : vector<8x32xf32>
    %cst_60 = arith.constant 1.000000e+00 : f32
    %172 = vector.broadcast %cst_60 : f32 to vector<8x32xf32>
    %173 = arith.addf %172, %171 : vector<8x32xf32>
    %174 = arith.divf %172, %173 : vector<8x32xf32>
    %175 = vector.extract_strided_slice %174 {offsets = [0, 0], sizes = [8, 16], strides = [1, 1]} : vector<8x32xf32> to vector<8x16xf32>
    %176 = vector.extract_strided_slice %174 {offsets = [0, 16], sizes = [8, 16], strides = [1, 1]} : vector<8x32xf32> to vector<8x16xf32>
    %177 = vector.extract_strided_slice %165 {offsets = [0, 32], sizes = [8, 16], strides = [1, 1]} : vector<8x48xf32> to vector<8x16xf32>
    %178 = vector.extract_strided_slice %166 {offsets = [0, 32], sizes = [8, 16], strides = [1, 1]} : vector<8x48xf32> to vector<8x16xf32>
    %179 = vector.broadcast %8 : vector<1x16xf32> to vector<8x16xf32>
    %180 = arith.addf %178, %179 : vector<8x16xf32>
    %181 = arith.mulf %175, %180 : vector<8x16xf32>
    %182 = arith.addf %177, %181 : vector<8x16xf32>
    %183 = math.tanh %182 : vector<8x16xf32>
    %cst_61 = arith.constant 1.000000e+00 : f32
    %184 = vector.broadcast %cst_61 : f32 to vector<8x16xf32>
    %185 = arith.subf %184, %176 : vector<8x16xf32>
    %186 = arith.mulf %185, %183 : vector<8x16xf32>
    %187 = arith.mulf %176, %129 : vector<8x16xf32>
    %188 = arith.addf %186, %187 : vector<8x16xf32>
    %c3_i32 = arith.constant 3 : i32
    %c0_62 = arith.constant 0 : index
    %189 = arith.index_cast %c3_i32 : i32 to index
    %c0_63 = arith.constant 0 : index
    %c0_64 = arith.constant 0 : index
    %190 = vector.load %arg1[%c0_62, %189, %c0_63, %c0_64] : memref<1x8x8x4xf32, #tpu.memory_space<vmem>>, vector<1x1x8x4xf32>
    %191 = vector.shape_cast %190 : vector<1x1x8x4xf32> to vector<8x4xf32>
    %cst_65 = arith.constant dense<0.000000e+00> : vector<8x4xf32>
    %192 = tpu.matmul %0, %191, %cst_65 {dimension_numbers = #tpu.dot_dimension_numbers<[1], [0], [0], [1], [0, 0, 1, 1], [], []>} : vector<8x8xf32>, vector<8x4xf32>, vector<8x4xf32> -> vector<8x4xf32>
    %cst_66 = arith.constant dense<0.000000e+00> : vector<8x16xf32>
    %193 = tpu.matmul %192, %9, %cst_66 {dimension_numbers = #tpu.dot_dimension_numbers<[1], [0], [0], [1], [0, 0, 1, 1], [], []>} : vector<8x4xf32>, vector<4x16xf32>, vector<8x16xf32> -> vector<8x16xf32>
    %cst_67 = arith.constant 0.000000e+00 : f32
    %194 = vector.broadcast %cst_67 : f32 to vector<8x16xf32>
    %195 = arith.maximumf %193, %194 : vector<8x16xf32>
    %cst_68 = arith.constant dense<0.000000e+00> : vector<8x96xf32>
    %196 = tpu.matmul %191, %1, %cst_68 {dimension_numbers = #tpu.dot_dimension_numbers<[1], [0], [0], [1], [0, 0, 1, 1], [], []>} : vector<8x4xf32>, vector<4x96xf32>, vector<8x96xf32> -> vector<8x96xf32>
    %197 = vector.broadcast %3 : vector<1x96xf32> to vector<8x96xf32>
    %198 = arith.addf %196, %197 : vector<8x96xf32>
    %cst_69 = arith.constant dense<0.000000e+00> : vector<8x96xf32>
    %199 = tpu.matmul %162, %2, %cst_69 {dimension_numbers = #tpu.dot_dimension_numbers<[1], [0], [0], [1], [0, 0, 1, 1], [], []>} : vector<8x32xf32>, vector<32x96xf32>, vector<8x96xf32> -> vector<8x96xf32>
    %200 = vector.extract_strided_slice %198 {offsets = [0, 0], sizes = [8, 64], strides = [1, 1]} : vector<8x96xf32> to vector<8x64xf32>
    %201 = vector.extract_strided_slice %199 {offsets = [0, 0], sizes = [8, 64], strides = [1, 1]} : vector<8x96xf32> to vector<8x64xf32>
    %202 = arith.addf %200, %201 : vector<8x64xf32>
    %203 = arith.negf %202 : vector<8x64xf32>
    %204 = math.exp %203 : vector<8x64xf32>
    %cst_70 = arith.constant 1.000000e+00 : f32
    %205 = vector.broadcast %cst_70 : f32 to vector<8x64xf32>
    %206 = arith.addf %205, %204 : vector<8x64xf32>
    %207 = arith.divf %205, %206 : vector<8x64xf32>
    %208 = vector.extract_strided_slice %207 {offsets = [0, 0], sizes = [8, 32], strides = [1, 1]} : vector<8x64xf32> to vector<8x32xf32>
    %209 = vector.extract_strided_slice %207 {offsets = [0, 32], sizes = [8, 32], strides = [1, 1]} : vector<8x64xf32> to vector<8x32xf32>
    %210 = vector.extract_strided_slice %198 {offsets = [0, 64], sizes = [8, 32], strides = [1, 1]} : vector<8x96xf32> to vector<8x32xf32>
    %211 = vector.extract_strided_slice %199 {offsets = [0, 64], sizes = [8, 32], strides = [1, 1]} : vector<8x96xf32> to vector<8x32xf32>
    %212 = vector.broadcast %4 : vector<1x32xf32> to vector<8x32xf32>
    %213 = arith.addf %211, %212 : vector<8x32xf32>
    %214 = arith.mulf %208, %213 : vector<8x32xf32>
    %215 = arith.addf %210, %214 : vector<8x32xf32>
    %216 = math.tanh %215 : vector<8x32xf32>
    %cst_71 = arith.constant 1.000000e+00 : f32
    %217 = vector.broadcast %cst_71 : f32 to vector<8x32xf32>
    %218 = arith.subf %217, %209 : vector<8x32xf32>
    %219 = arith.mulf %218, %216 : vector<8x32xf32>
    %220 = arith.mulf %209, %162 : vector<8x32xf32>
    %221 = arith.addf %219, %220 : vector<8x32xf32>
    %cst_72 = arith.constant dense<0.000000e+00> : vector<8x48xf32>
    %222 = tpu.matmul %195, %5, %cst_72 {dimension_numbers = #tpu.dot_dimension_numbers<[1], [0], [0], [1], [0, 0, 1, 1], [], []>} : vector<8x16xf32>, vector<16x48xf32>, vector<8x48xf32> -> vector<8x48xf32>
    %223 = vector.broadcast %7 : vector<1x48xf32> to vector<8x48xf32>
    %224 = arith.addf %222, %223 : vector<8x48xf32>
    %cst_73 = arith.constant dense<0.000000e+00> : vector<8x48xf32>
    %225 = tpu.matmul %188, %6, %cst_73 {dimension_numbers = #tpu.dot_dimension_numbers<[1], [0], [0], [1], [0, 0, 1, 1], [], []>} : vector<8x16xf32>, vector<16x48xf32>, vector<8x48xf32> -> vector<8x48xf32>
    %226 = vector.extract_strided_slice %224 {offsets = [0, 0], sizes = [8, 32], strides = [1, 1]} : vector<8x48xf32> to vector<8x32xf32>
    %227 = vector.extract_strided_slice %225 {offsets = [0, 0], sizes = [8, 32], strides = [1, 1]} : vector<8x48xf32> to vector<8x32xf32>
    %228 = arith.addf %226, %227 : vector<8x32xf32>
    %229 = arith.negf %228 : vector<8x32xf32>
    %230 = math.exp %229 : vector<8x32xf32>
    %cst_74 = arith.constant 1.000000e+00 : f32
    %231 = vector.broadcast %cst_74 : f32 to vector<8x32xf32>
    %232 = arith.addf %231, %230 : vector<8x32xf32>
    %233 = arith.divf %231, %232 : vector<8x32xf32>
    %234 = vector.extract_strided_slice %233 {offsets = [0, 0], sizes = [8, 16], strides = [1, 1]} : vector<8x32xf32> to vector<8x16xf32>
    %235 = vector.extract_strided_slice %233 {offsets = [0, 16], sizes = [8, 16], strides = [1, 1]} : vector<8x32xf32> to vector<8x16xf32>
    %236 = vector.extract_strided_slice %224 {offsets = [0, 32], sizes = [8, 16], strides = [1, 1]} : vector<8x48xf32> to vector<8x16xf32>
    %237 = vector.extract_strided_slice %225 {offsets = [0, 32], sizes = [8, 16], strides = [1, 1]} : vector<8x48xf32> to vector<8x16xf32>
    %238 = vector.broadcast %8 : vector<1x16xf32> to vector<8x16xf32>
    %239 = arith.addf %237, %238 : vector<8x16xf32>
    %240 = arith.mulf %234, %239 : vector<8x16xf32>
    %241 = arith.addf %236, %240 : vector<8x16xf32>
    %242 = math.tanh %241 : vector<8x16xf32>
    %cst_75 = arith.constant 1.000000e+00 : f32
    %243 = vector.broadcast %cst_75 : f32 to vector<8x16xf32>
    %244 = arith.subf %243, %235 : vector<8x16xf32>
    %245 = arith.mulf %244, %242 : vector<8x16xf32>
    %246 = arith.mulf %235, %188 : vector<8x16xf32>
    %247 = arith.addf %245, %246 : vector<8x16xf32>
    %c4_i32 = arith.constant 4 : i32
    %c0_76 = arith.constant 0 : index
    %248 = arith.index_cast %c4_i32 : i32 to index
    %c0_77 = arith.constant 0 : index
    %c0_78 = arith.constant 0 : index
    %249 = vector.load %arg1[%c0_76, %248, %c0_77, %c0_78] : memref<1x8x8x4xf32, #tpu.memory_space<vmem>>, vector<1x1x8x4xf32>
    %250 = vector.shape_cast %249 : vector<1x1x8x4xf32> to vector<8x4xf32>
    %cst_79 = arith.constant dense<0.000000e+00> : vector<8x4xf32>
    %251 = tpu.matmul %0, %250, %cst_79 {dimension_numbers = #tpu.dot_dimension_numbers<[1], [0], [0], [1], [0, 0, 1, 1], [], []>} : vector<8x8xf32>, vector<8x4xf32>, vector<8x4xf32> -> vector<8x4xf32>
    %cst_80 = arith.constant dense<0.000000e+00> : vector<8x16xf32>
    %252 = tpu.matmul %251, %9, %cst_80 {dimension_numbers = #tpu.dot_dimension_numbers<[1], [0], [0], [1], [0, 0, 1, 1], [], []>} : vector<8x4xf32>, vector<4x16xf32>, vector<8x16xf32> -> vector<8x16xf32>
    %cst_81 = arith.constant 0.000000e+00 : f32
    %253 = vector.broadcast %cst_81 : f32 to vector<8x16xf32>
    %254 = arith.maximumf %252, %253 : vector<8x16xf32>
    %cst_82 = arith.constant dense<0.000000e+00> : vector<8x96xf32>
    %255 = tpu.matmul %250, %1, %cst_82 {dimension_numbers = #tpu.dot_dimension_numbers<[1], [0], [0], [1], [0, 0, 1, 1], [], []>} : vector<8x4xf32>, vector<4x96xf32>, vector<8x96xf32> -> vector<8x96xf32>
    %256 = vector.broadcast %3 : vector<1x96xf32> to vector<8x96xf32>
    %257 = arith.addf %255, %256 : vector<8x96xf32>
    %cst_83 = arith.constant dense<0.000000e+00> : vector<8x96xf32>
    %258 = tpu.matmul %221, %2, %cst_83 {dimension_numbers = #tpu.dot_dimension_numbers<[1], [0], [0], [1], [0, 0, 1, 1], [], []>} : vector<8x32xf32>, vector<32x96xf32>, vector<8x96xf32> -> vector<8x96xf32>
    %259 = vector.extract_strided_slice %257 {offsets = [0, 0], sizes = [8, 64], strides = [1, 1]} : vector<8x96xf32> to vector<8x64xf32>
    %260 = vector.extract_strided_slice %258 {offsets = [0, 0], sizes = [8, 64], strides = [1, 1]} : vector<8x96xf32> to vector<8x64xf32>
    %261 = arith.addf %259, %260 : vector<8x64xf32>
    %262 = arith.negf %261 : vector<8x64xf32>
    %263 = math.exp %262 : vector<8x64xf32>
    %cst_84 = arith.constant 1.000000e+00 : f32
    %264 = vector.broadcast %cst_84 : f32 to vector<8x64xf32>
    %265 = arith.addf %264, %263 : vector<8x64xf32>
    %266 = arith.divf %264, %265 : vector<8x64xf32>
    %267 = vector.extract_strided_slice %266 {offsets = [0, 0], sizes = [8, 32], strides = [1, 1]} : vector<8x64xf32> to vector<8x32xf32>
    %268 = vector.extract_strided_slice %266 {offsets = [0, 32], sizes = [8, 32], strides = [1, 1]} : vector<8x64xf32> to vector<8x32xf32>
    %269 = vector.extract_strided_slice %257 {offsets = [0, 64], sizes = [8, 32], strides = [1, 1]} : vector<8x96xf32> to vector<8x32xf32>
    %270 = vector.extract_strided_slice %258 {offsets = [0, 64], sizes = [8, 32], strides = [1, 1]} : vector<8x96xf32> to vector<8x32xf32>
    %271 = vector.broadcast %4 : vector<1x32xf32> to vector<8x32xf32>
    %272 = arith.addf %270, %271 : vector<8x32xf32>
    %273 = arith.mulf %267, %272 : vector<8x32xf32>
    %274 = arith.addf %269, %273 : vector<8x32xf32>
    %275 = math.tanh %274 : vector<8x32xf32>
    %cst_85 = arith.constant 1.000000e+00 : f32
    %276 = vector.broadcast %cst_85 : f32 to vector<8x32xf32>
    %277 = arith.subf %276, %268 : vector<8x32xf32>
    %278 = arith.mulf %277, %275 : vector<8x32xf32>
    %279 = arith.mulf %268, %221 : vector<8x32xf32>
    %280 = arith.addf %278, %279 : vector<8x32xf32>
    %cst_86 = arith.constant dense<0.000000e+00> : vector<8x48xf32>
    %281 = tpu.matmul %254, %5, %cst_86 {dimension_numbers = #tpu.dot_dimension_numbers<[1], [0], [0], [1], [0, 0, 1, 1], [], []>} : vector<8x16xf32>, vector<16x48xf32>, vector<8x48xf32> -> vector<8x48xf32>
    %282 = vector.broadcast %7 : vector<1x48xf32> to vector<8x48xf32>
    %283 = arith.addf %281, %282 : vector<8x48xf32>
    %cst_87 = arith.constant dense<0.000000e+00> : vector<8x48xf32>
    %284 = tpu.matmul %247, %6, %cst_87 {dimension_numbers = #tpu.dot_dimension_numbers<[1], [0], [0], [1], [0, 0, 1, 1], [], []>} : vector<8x16xf32>, vector<16x48xf32>, vector<8x48xf32> -> vector<8x48xf32>
    %285 = vector.extract_strided_slice %283 {offsets = [0, 0], sizes = [8, 32], strides = [1, 1]} : vector<8x48xf32> to vector<8x32xf32>
    %286 = vector.extract_strided_slice %284 {offsets = [0, 0], sizes = [8, 32], strides = [1, 1]} : vector<8x48xf32> to vector<8x32xf32>
    %287 = arith.addf %285, %286 : vector<8x32xf32>
    %288 = arith.negf %287 : vector<8x32xf32>
    %289 = math.exp %288 : vector<8x32xf32>
    %cst_88 = arith.constant 1.000000e+00 : f32
    %290 = vector.broadcast %cst_88 : f32 to vector<8x32xf32>
    %291 = arith.addf %290, %289 : vector<8x32xf32>
    %292 = arith.divf %290, %291 : vector<8x32xf32>
    %293 = vector.extract_strided_slice %292 {offsets = [0, 0], sizes = [8, 16], strides = [1, 1]} : vector<8x32xf32> to vector<8x16xf32>
    %294 = vector.extract_strided_slice %292 {offsets = [0, 16], sizes = [8, 16], strides = [1, 1]} : vector<8x32xf32> to vector<8x16xf32>
    %295 = vector.extract_strided_slice %283 {offsets = [0, 32], sizes = [8, 16], strides = [1, 1]} : vector<8x48xf32> to vector<8x16xf32>
    %296 = vector.extract_strided_slice %284 {offsets = [0, 32], sizes = [8, 16], strides = [1, 1]} : vector<8x48xf32> to vector<8x16xf32>
    %297 = vector.broadcast %8 : vector<1x16xf32> to vector<8x16xf32>
    %298 = arith.addf %296, %297 : vector<8x16xf32>
    %299 = arith.mulf %293, %298 : vector<8x16xf32>
    %300 = arith.addf %295, %299 : vector<8x16xf32>
    %301 = math.tanh %300 : vector<8x16xf32>
    %cst_89 = arith.constant 1.000000e+00 : f32
    %302 = vector.broadcast %cst_89 : f32 to vector<8x16xf32>
    %303 = arith.subf %302, %294 : vector<8x16xf32>
    %304 = arith.mulf %303, %301 : vector<8x16xf32>
    %305 = arith.mulf %294, %247 : vector<8x16xf32>
    %306 = arith.addf %304, %305 : vector<8x16xf32>
    %c5_i32 = arith.constant 5 : i32
    %c0_90 = arith.constant 0 : index
    %307 = arith.index_cast %c5_i32 : i32 to index
    %c0_91 = arith.constant 0 : index
    %c0_92 = arith.constant 0 : index
    %308 = vector.load %arg1[%c0_90, %307, %c0_91, %c0_92] : memref<1x8x8x4xf32, #tpu.memory_space<vmem>>, vector<1x1x8x4xf32>
    %309 = vector.shape_cast %308 : vector<1x1x8x4xf32> to vector<8x4xf32>
    %cst_93 = arith.constant dense<0.000000e+00> : vector<8x4xf32>
    %310 = tpu.matmul %0, %309, %cst_93 {dimension_numbers = #tpu.dot_dimension_numbers<[1], [0], [0], [1], [0, 0, 1, 1], [], []>} : vector<8x8xf32>, vector<8x4xf32>, vector<8x4xf32> -> vector<8x4xf32>
    %cst_94 = arith.constant dense<0.000000e+00> : vector<8x16xf32>
    %311 = tpu.matmul %310, %9, %cst_94 {dimension_numbers = #tpu.dot_dimension_numbers<[1], [0], [0], [1], [0, 0, 1, 1], [], []>} : vector<8x4xf32>, vector<4x16xf32>, vector<8x16xf32> -> vector<8x16xf32>
    %cst_95 = arith.constant 0.000000e+00 : f32
    %312 = vector.broadcast %cst_95 : f32 to vector<8x16xf32>
    %313 = arith.maximumf %311, %312 : vector<8x16xf32>
    %cst_96 = arith.constant dense<0.000000e+00> : vector<8x96xf32>
    %314 = tpu.matmul %309, %1, %cst_96 {dimension_numbers = #tpu.dot_dimension_numbers<[1], [0], [0], [1], [0, 0, 1, 1], [], []>} : vector<8x4xf32>, vector<4x96xf32>, vector<8x96xf32> -> vector<8x96xf32>
    %315 = vector.broadcast %3 : vector<1x96xf32> to vector<8x96xf32>
    %316 = arith.addf %314, %315 : vector<8x96xf32>
    %cst_97 = arith.constant dense<0.000000e+00> : vector<8x96xf32>
    %317 = tpu.matmul %280, %2, %cst_97 {dimension_numbers = #tpu.dot_dimension_numbers<[1], [0], [0], [1], [0, 0, 1, 1], [], []>} : vector<8x32xf32>, vector<32x96xf32>, vector<8x96xf32> -> vector<8x96xf32>
    %318 = vector.extract_strided_slice %316 {offsets = [0, 0], sizes = [8, 64], strides = [1, 1]} : vector<8x96xf32> to vector<8x64xf32>
    %319 = vector.extract_strided_slice %317 {offsets = [0, 0], sizes = [8, 64], strides = [1, 1]} : vector<8x96xf32> to vector<8x64xf32>
    %320 = arith.addf %318, %319 : vector<8x64xf32>
    %321 = arith.negf %320 : vector<8x64xf32>
    %322 = math.exp %321 : vector<8x64xf32>
    %cst_98 = arith.constant 1.000000e+00 : f32
    %323 = vector.broadcast %cst_98 : f32 to vector<8x64xf32>
    %324 = arith.addf %323, %322 : vector<8x64xf32>
    %325 = arith.divf %323, %324 : vector<8x64xf32>
    %326 = vector.extract_strided_slice %325 {offsets = [0, 0], sizes = [8, 32], strides = [1, 1]} : vector<8x64xf32> to vector<8x32xf32>
    %327 = vector.extract_strided_slice %325 {offsets = [0, 32], sizes = [8, 32], strides = [1, 1]} : vector<8x64xf32> to vector<8x32xf32>
    %328 = vector.extract_strided_slice %316 {offsets = [0, 64], sizes = [8, 32], strides = [1, 1]} : vector<8x96xf32> to vector<8x32xf32>
    %329 = vector.extract_strided_slice %317 {offsets = [0, 64], sizes = [8, 32], strides = [1, 1]} : vector<8x96xf32> to vector<8x32xf32>
    %330 = vector.broadcast %4 : vector<1x32xf32> to vector<8x32xf32>
    %331 = arith.addf %329, %330 : vector<8x32xf32>
    %332 = arith.mulf %326, %331 : vector<8x32xf32>
    %333 = arith.addf %328, %332 : vector<8x32xf32>
    %334 = math.tanh %333 : vector<8x32xf32>
    %cst_99 = arith.constant 1.000000e+00 : f32
    %335 = vector.broadcast %cst_99 : f32 to vector<8x32xf32>
    %336 = arith.subf %335, %327 : vector<8x32xf32>
    %337 = arith.mulf %336, %334 : vector<8x32xf32>
    %338 = arith.mulf %327, %280 : vector<8x32xf32>
    %339 = arith.addf %337, %338 : vector<8x32xf32>
    %cst_100 = arith.constant dense<0.000000e+00> : vector<8x48xf32>
    %340 = tpu.matmul %313, %5, %cst_100 {dimension_numbers = #tpu.dot_dimension_numbers<[1], [0], [0], [1], [0, 0, 1, 1], [], []>} : vector<8x16xf32>, vector<16x48xf32>, vector<8x48xf32> -> vector<8x48xf32>
    %341 = vector.broadcast %7 : vector<1x48xf32> to vector<8x48xf32>
    %342 = arith.addf %340, %341 : vector<8x48xf32>
    %cst_101 = arith.constant dense<0.000000e+00> : vector<8x48xf32>
    %343 = tpu.matmul %306, %6, %cst_101 {dimension_numbers = #tpu.dot_dimension_numbers<[1], [0], [0], [1], [0, 0, 1, 1], [], []>} : vector<8x16xf32>, vector<16x48xf32>, vector<8x48xf32> -> vector<8x48xf32>
    %344 = vector.extract_strided_slice %342 {offsets = [0, 0], sizes = [8, 32], strides = [1, 1]} : vector<8x48xf32> to vector<8x32xf32>
    %345 = vector.extract_strided_slice %343 {offsets = [0, 0], sizes = [8, 32], strides = [1, 1]} : vector<8x48xf32> to vector<8x32xf32>
    %346 = arith.addf %344, %345 : vector<8x32xf32>
    %347 = arith.negf %346 : vector<8x32xf32>
    %348 = math.exp %347 : vector<8x32xf32>
    %cst_102 = arith.constant 1.000000e+00 : f32
    %349 = vector.broadcast %cst_102 : f32 to vector<8x32xf32>
    %350 = arith.addf %349, %348 : vector<8x32xf32>
    %351 = arith.divf %349, %350 : vector<8x32xf32>
    %352 = vector.extract_strided_slice %351 {offsets = [0, 0], sizes = [8, 16], strides = [1, 1]} : vector<8x32xf32> to vector<8x16xf32>
    %353 = vector.extract_strided_slice %351 {offsets = [0, 16], sizes = [8, 16], strides = [1, 1]} : vector<8x32xf32> to vector<8x16xf32>
    %354 = vector.extract_strided_slice %342 {offsets = [0, 32], sizes = [8, 16], strides = [1, 1]} : vector<8x48xf32> to vector<8x16xf32>
    %355 = vector.extract_strided_slice %343 {offsets = [0, 32], sizes = [8, 16], strides = [1, 1]} : vector<8x48xf32> to vector<8x16xf32>
    %356 = vector.broadcast %8 : vector<1x16xf32> to vector<8x16xf32>
    %357 = arith.addf %355, %356 : vector<8x16xf32>
    %358 = arith.mulf %352, %357 : vector<8x16xf32>
    %359 = arith.addf %354, %358 : vector<8x16xf32>
    %360 = math.tanh %359 : vector<8x16xf32>
    %cst_103 = arith.constant 1.000000e+00 : f32
    %361 = vector.broadcast %cst_103 : f32 to vector<8x16xf32>
    %362 = arith.subf %361, %353 : vector<8x16xf32>
    %363 = arith.mulf %362, %360 : vector<8x16xf32>
    %364 = arith.mulf %353, %306 : vector<8x16xf32>
    %365 = arith.addf %363, %364 : vector<8x16xf32>
    %c6_i32 = arith.constant 6 : i32
    %c0_104 = arith.constant 0 : index
    %366 = arith.index_cast %c6_i32 : i32 to index
    %c0_105 = arith.constant 0 : index
    %c0_106 = arith.constant 0 : index
    %367 = vector.load %arg1[%c0_104, %366, %c0_105, %c0_106] : memref<1x8x8x4xf32, #tpu.memory_space<vmem>>, vector<1x1x8x4xf32>
    %368 = vector.shape_cast %367 : vector<1x1x8x4xf32> to vector<8x4xf32>
    %cst_107 = arith.constant dense<0.000000e+00> : vector<8x4xf32>
    %369 = tpu.matmul %0, %368, %cst_107 {dimension_numbers = #tpu.dot_dimension_numbers<[1], [0], [0], [1], [0, 0, 1, 1], [], []>} : vector<8x8xf32>, vector<8x4xf32>, vector<8x4xf32> -> vector<8x4xf32>
    %cst_108 = arith.constant dense<0.000000e+00> : vector<8x16xf32>
    %370 = tpu.matmul %369, %9, %cst_108 {dimension_numbers = #tpu.dot_dimension_numbers<[1], [0], [0], [1], [0, 0, 1, 1], [], []>} : vector<8x4xf32>, vector<4x16xf32>, vector<8x16xf32> -> vector<8x16xf32>
    %cst_109 = arith.constant 0.000000e+00 : f32
    %371 = vector.broadcast %cst_109 : f32 to vector<8x16xf32>
    %372 = arith.maximumf %370, %371 : vector<8x16xf32>
    %cst_110 = arith.constant dense<0.000000e+00> : vector<8x96xf32>
    %373 = tpu.matmul %368, %1, %cst_110 {dimension_numbers = #tpu.dot_dimension_numbers<[1], [0], [0], [1], [0, 0, 1, 1], [], []>} : vector<8x4xf32>, vector<4x96xf32>, vector<8x96xf32> -> vector<8x96xf32>
    %374 = vector.broadcast %3 : vector<1x96xf32> to vector<8x96xf32>
    %375 = arith.addf %373, %374 : vector<8x96xf32>
    %cst_111 = arith.constant dense<0.000000e+00> : vector<8x96xf32>
    %376 = tpu.matmul %339, %2, %cst_111 {dimension_numbers = #tpu.dot_dimension_numbers<[1], [0], [0], [1], [0, 0, 1, 1], [], []>} : vector<8x32xf32>, vector<32x96xf32>, vector<8x96xf32> -> vector<8x96xf32>
    %377 = vector.extract_strided_slice %375 {offsets = [0, 0], sizes = [8, 64], strides = [1, 1]} : vector<8x96xf32> to vector<8x64xf32>
    %378 = vector.extract_strided_slice %376 {offsets = [0, 0], sizes = [8, 64], strides = [1, 1]} : vector<8x96xf32> to vector<8x64xf32>
    %379 = arith.addf %377, %378 : vector<8x64xf32>
    %380 = arith.negf %379 : vector<8x64xf32>
    %381 = math.exp %380 : vector<8x64xf32>
    %cst_112 = arith.constant 1.000000e+00 : f32
    %382 = vector.broadcast %cst_112 : f32 to vector<8x64xf32>
    %383 = arith.addf %382, %381 : vector<8x64xf32>
    %384 = arith.divf %382, %383 : vector<8x64xf32>
    %385 = vector.extract_strided_slice %384 {offsets = [0, 0], sizes = [8, 32], strides = [1, 1]} : vector<8x64xf32> to vector<8x32xf32>
    %386 = vector.extract_strided_slice %384 {offsets = [0, 32], sizes = [8, 32], strides = [1, 1]} : vector<8x64xf32> to vector<8x32xf32>
    %387 = vector.extract_strided_slice %375 {offsets = [0, 64], sizes = [8, 32], strides = [1, 1]} : vector<8x96xf32> to vector<8x32xf32>
    %388 = vector.extract_strided_slice %376 {offsets = [0, 64], sizes = [8, 32], strides = [1, 1]} : vector<8x96xf32> to vector<8x32xf32>
    %389 = vector.broadcast %4 : vector<1x32xf32> to vector<8x32xf32>
    %390 = arith.addf %388, %389 : vector<8x32xf32>
    %391 = arith.mulf %385, %390 : vector<8x32xf32>
    %392 = arith.addf %387, %391 : vector<8x32xf32>
    %393 = math.tanh %392 : vector<8x32xf32>
    %cst_113 = arith.constant 1.000000e+00 : f32
    %394 = vector.broadcast %cst_113 : f32 to vector<8x32xf32>
    %395 = arith.subf %394, %386 : vector<8x32xf32>
    %396 = arith.mulf %395, %393 : vector<8x32xf32>
    %397 = arith.mulf %386, %339 : vector<8x32xf32>
    %398 = arith.addf %396, %397 : vector<8x32xf32>
    %cst_114 = arith.constant dense<0.000000e+00> : vector<8x48xf32>
    %399 = tpu.matmul %372, %5, %cst_114 {dimension_numbers = #tpu.dot_dimension_numbers<[1], [0], [0], [1], [0, 0, 1, 1], [], []>} : vector<8x16xf32>, vector<16x48xf32>, vector<8x48xf32> -> vector<8x48xf32>
    %400 = vector.broadcast %7 : vector<1x48xf32> to vector<8x48xf32>
    %401 = arith.addf %399, %400 : vector<8x48xf32>
    %cst_115 = arith.constant dense<0.000000e+00> : vector<8x48xf32>
    %402 = tpu.matmul %365, %6, %cst_115 {dimension_numbers = #tpu.dot_dimension_numbers<[1], [0], [0], [1], [0, 0, 1, 1], [], []>} : vector<8x16xf32>, vector<16x48xf32>, vector<8x48xf32> -> vector<8x48xf32>
    %403 = vector.extract_strided_slice %401 {offsets = [0, 0], sizes = [8, 32], strides = [1, 1]} : vector<8x48xf32> to vector<8x32xf32>
    %404 = vector.extract_strided_slice %402 {offsets = [0, 0], sizes = [8, 32], strides = [1, 1]} : vector<8x48xf32> to vector<8x32xf32>
    %405 = arith.addf %403, %404 : vector<8x32xf32>
    %406 = arith.negf %405 : vector<8x32xf32>
    %407 = math.exp %406 : vector<8x32xf32>
    %cst_116 = arith.constant 1.000000e+00 : f32
    %408 = vector.broadcast %cst_116 : f32 to vector<8x32xf32>
    %409 = arith.addf %408, %407 : vector<8x32xf32>
    %410 = arith.divf %408, %409 : vector<8x32xf32>
    %411 = vector.extract_strided_slice %410 {offsets = [0, 0], sizes = [8, 16], strides = [1, 1]} : vector<8x32xf32> to vector<8x16xf32>
    %412 = vector.extract_strided_slice %410 {offsets = [0, 16], sizes = [8, 16], strides = [1, 1]} : vector<8x32xf32> to vector<8x16xf32>
    %413 = vector.extract_strided_slice %401 {offsets = [0, 32], sizes = [8, 16], strides = [1, 1]} : vector<8x48xf32> to vector<8x16xf32>
    %414 = vector.extract_strided_slice %402 {offsets = [0, 32], sizes = [8, 16], strides = [1, 1]} : vector<8x48xf32> to vector<8x16xf32>
    %415 = vector.broadcast %8 : vector<1x16xf32> to vector<8x16xf32>
    %416 = arith.addf %414, %415 : vector<8x16xf32>
    %417 = arith.mulf %411, %416 : vector<8x16xf32>
    %418 = arith.addf %413, %417 : vector<8x16xf32>
    %419 = math.tanh %418 : vector<8x16xf32>
    %cst_117 = arith.constant 1.000000e+00 : f32
    %420 = vector.broadcast %cst_117 : f32 to vector<8x16xf32>
    %421 = arith.subf %420, %412 : vector<8x16xf32>
    %422 = arith.mulf %421, %419 : vector<8x16xf32>
    %423 = arith.mulf %412, %365 : vector<8x16xf32>
    %424 = arith.addf %422, %423 : vector<8x16xf32>
    %c7_i32 = arith.constant 7 : i32
    %c0_118 = arith.constant 0 : index
    %425 = arith.index_cast %c7_i32 : i32 to index
    %c0_119 = arith.constant 0 : index
    %c0_120 = arith.constant 0 : index
    %426 = vector.load %arg1[%c0_118, %425, %c0_119, %c0_120] : memref<1x8x8x4xf32, #tpu.memory_space<vmem>>, vector<1x1x8x4xf32>
    %427 = vector.shape_cast %426 : vector<1x1x8x4xf32> to vector<8x4xf32>
    %cst_121 = arith.constant dense<0.000000e+00> : vector<8x4xf32>
    %428 = tpu.matmul %0, %427, %cst_121 {dimension_numbers = #tpu.dot_dimension_numbers<[1], [0], [0], [1], [0, 0, 1, 1], [], []>} : vector<8x8xf32>, vector<8x4xf32>, vector<8x4xf32> -> vector<8x4xf32>
    %cst_122 = arith.constant dense<0.000000e+00> : vector<8x16xf32>
    %429 = tpu.matmul %428, %9, %cst_122 {dimension_numbers = #tpu.dot_dimension_numbers<[1], [0], [0], [1], [0, 0, 1, 1], [], []>} : vector<8x4xf32>, vector<4x16xf32>, vector<8x16xf32> -> vector<8x16xf32>
    %cst_123 = arith.constant 0.000000e+00 : f32
    %430 = vector.broadcast %cst_123 : f32 to vector<8x16xf32>
    %431 = arith.maximumf %429, %430 : vector<8x16xf32>
    %cst_124 = arith.constant dense<0.000000e+00> : vector<8x96xf32>
    %432 = tpu.matmul %427, %1, %cst_124 {dimension_numbers = #tpu.dot_dimension_numbers<[1], [0], [0], [1], [0, 0, 1, 1], [], []>} : vector<8x4xf32>, vector<4x96xf32>, vector<8x96xf32> -> vector<8x96xf32>
    %433 = vector.broadcast %3 : vector<1x96xf32> to vector<8x96xf32>
    %434 = arith.addf %432, %433 : vector<8x96xf32>
    %cst_125 = arith.constant dense<0.000000e+00> : vector<8x96xf32>
    %435 = tpu.matmul %398, %2, %cst_125 {dimension_numbers = #tpu.dot_dimension_numbers<[1], [0], [0], [1], [0, 0, 1, 1], [], []>} : vector<8x32xf32>, vector<32x96xf32>, vector<8x96xf32> -> vector<8x96xf32>
    %436 = vector.extract_strided_slice %434 {offsets = [0, 0], sizes = [8, 64], strides = [1, 1]} : vector<8x96xf32> to vector<8x64xf32>
    %437 = vector.extract_strided_slice %435 {offsets = [0, 0], sizes = [8, 64], strides = [1, 1]} : vector<8x96xf32> to vector<8x64xf32>
    %438 = arith.addf %436, %437 : vector<8x64xf32>
    %439 = arith.negf %438 : vector<8x64xf32>
    %440 = math.exp %439 : vector<8x64xf32>
    %cst_126 = arith.constant 1.000000e+00 : f32
    %441 = vector.broadcast %cst_126 : f32 to vector<8x64xf32>
    %442 = arith.addf %441, %440 : vector<8x64xf32>
    %443 = arith.divf %441, %442 : vector<8x64xf32>
    %444 = vector.extract_strided_slice %443 {offsets = [0, 0], sizes = [8, 32], strides = [1, 1]} : vector<8x64xf32> to vector<8x32xf32>
    %445 = vector.extract_strided_slice %443 {offsets = [0, 32], sizes = [8, 32], strides = [1, 1]} : vector<8x64xf32> to vector<8x32xf32>
    %446 = vector.extract_strided_slice %434 {offsets = [0, 64], sizes = [8, 32], strides = [1, 1]} : vector<8x96xf32> to vector<8x32xf32>
    %447 = vector.extract_strided_slice %435 {offsets = [0, 64], sizes = [8, 32], strides = [1, 1]} : vector<8x96xf32> to vector<8x32xf32>
    %448 = vector.broadcast %4 : vector<1x32xf32> to vector<8x32xf32>
    %449 = arith.addf %447, %448 : vector<8x32xf32>
    %450 = arith.mulf %444, %449 : vector<8x32xf32>
    %451 = arith.addf %446, %450 : vector<8x32xf32>
    %452 = math.tanh %451 : vector<8x32xf32>
    %cst_127 = arith.constant 1.000000e+00 : f32
    %453 = vector.broadcast %cst_127 : f32 to vector<8x32xf32>
    %454 = arith.subf %453, %445 : vector<8x32xf32>
    %455 = arith.mulf %454, %452 : vector<8x32xf32>
    %456 = arith.mulf %445, %398 : vector<8x32xf32>
    %457 = arith.addf %455, %456 : vector<8x32xf32>
    %cst_128 = arith.constant dense<0.000000e+00> : vector<8x48xf32>
    %458 = tpu.matmul %431, %5, %cst_128 {dimension_numbers = #tpu.dot_dimension_numbers<[1], [0], [0], [1], [0, 0, 1, 1], [], []>} : vector<8x16xf32>, vector<16x48xf32>, vector<8x48xf32> -> vector<8x48xf32>
    %459 = vector.broadcast %7 : vector<1x48xf32> to vector<8x48xf32>
    %460 = arith.addf %458, %459 : vector<8x48xf32>
    %cst_129 = arith.constant dense<0.000000e+00> : vector<8x48xf32>
    %461 = tpu.matmul %424, %6, %cst_129 {dimension_numbers = #tpu.dot_dimension_numbers<[1], [0], [0], [1], [0, 0, 1, 1], [], []>} : vector<8x16xf32>, vector<16x48xf32>, vector<8x48xf32> -> vector<8x48xf32>
    %462 = vector.extract_strided_slice %460 {offsets = [0, 0], sizes = [8, 32], strides = [1, 1]} : vector<8x48xf32> to vector<8x32xf32>
    %463 = vector.extract_strided_slice %461 {offsets = [0, 0], sizes = [8, 32], strides = [1, 1]} : vector<8x48xf32> to vector<8x32xf32>
    %464 = arith.addf %462, %463 : vector<8x32xf32>
    %465 = arith.negf %464 : vector<8x32xf32>
    %466 = math.exp %465 : vector<8x32xf32>
    %cst_130 = arith.constant 1.000000e+00 : f32
    %467 = vector.broadcast %cst_130 : f32 to vector<8x32xf32>
    %468 = arith.addf %467, %466 : vector<8x32xf32>
    %469 = arith.divf %467, %468 : vector<8x32xf32>
    %470 = vector.extract_strided_slice %469 {offsets = [0, 0], sizes = [8, 16], strides = [1, 1]} : vector<8x32xf32> to vector<8x16xf32>
    %471 = vector.extract_strided_slice %469 {offsets = [0, 16], sizes = [8, 16], strides = [1, 1]} : vector<8x32xf32> to vector<8x16xf32>
    %472 = vector.extract_strided_slice %460 {offsets = [0, 32], sizes = [8, 16], strides = [1, 1]} : vector<8x48xf32> to vector<8x16xf32>
    %473 = vector.extract_strided_slice %461 {offsets = [0, 32], sizes = [8, 16], strides = [1, 1]} : vector<8x48xf32> to vector<8x16xf32>
    %474 = vector.broadcast %8 : vector<1x16xf32> to vector<8x16xf32>
    %475 = arith.addf %473, %474 : vector<8x16xf32>
    %476 = arith.mulf %470, %475 : vector<8x16xf32>
    %477 = arith.addf %472, %476 : vector<8x16xf32>
    %478 = math.tanh %477 : vector<8x16xf32>
    %cst_131 = arith.constant 1.000000e+00 : f32
    %479 = vector.broadcast %cst_131 : f32 to vector<8x16xf32>
    %480 = arith.subf %479, %471 : vector<8x16xf32>
    %481 = arith.mulf %480, %478 : vector<8x16xf32>
    %482 = arith.mulf %471, %424 : vector<8x16xf32>
    %483 = arith.addf %481, %482 : vector<8x16xf32>
    %c8_i32 = arith.constant 8 : i32
    %484 = vector.extract_strided_slice %457 {offsets = [0, 0], sizes = [8, 16], strides = [1, 1]} : vector<8x32xf32> to vector<8x16xf32>
    %485 = vector.extract_strided_slice %457 {offsets = [0, 16], sizes = [8, 16], strides = [1, 1]} : vector<8x32xf32> to vector<8x16xf32>
    %cst_132 = arith.constant dense<0.000000e+00> : vector<8x16xf32>
    %486 = tpu.matmul %0, %484, %cst_132 {dimension_numbers = #tpu.dot_dimension_numbers<[1], [0], [0], [1], [0, 0, 1, 1], [], []>} : vector<8x8xf32>, vector<8x16xf32>, vector<8x16xf32> -> vector<8x16xf32>
    %c0_133 = arith.constant 0 : index
    %c0_134 = arith.constant 0 : index
    %487 = vector.load %arg11[%c0_133, %c0_134] : memref<16x16xf32, #tpu.memory_space<vmem>>, vector<16x16xf32>
    %cst_135 = arith.constant dense<0.000000e+00> : vector<8x16xf32>
    %488 = tpu.matmul %486, %487, %cst_135 {dimension_numbers = #tpu.dot_dimension_numbers<[1], [0], [0], [1], [0, 0, 1, 1], [], []>} : vector<8x16xf32>, vector<16x16xf32>, vector<8x16xf32> -> vector<8x16xf32>
    %cst_136 = arith.constant 0.000000e+00 : f32
    %489 = vector.broadcast %cst_136 : f32 to vector<8x16xf32>
    %490 = arith.maximumf %488, %489 : vector<8x16xf32>
    %c0_137 = arith.constant 0 : index
    %c0_138 = arith.constant 0 : index
    %491 = vector.load %arg13[%c0_137, %c0_138] : memref<16x16xf32, #tpu.memory_space<vmem>>, vector<16x16xf32>
    %cst_139 = arith.constant dense<0.000000e+00> : vector<8x16xf32>
    %492 = tpu.matmul %490, %491, %cst_139 {dimension_numbers = #tpu.dot_dimension_numbers<[1], [0], [0], [1], [0, 0, 1, 1], [], []>} : vector<8x16xf32>, vector<16x16xf32>, vector<8x16xf32> -> vector<8x16xf32>
    %c0_140 = arith.constant 0 : index
    %c0_141 = arith.constant 0 : index
    %493 = vector.load %arg14[%c0_140, %c0_141] : memref<16x16xf32, #tpu.memory_space<vmem>>, vector<16x16xf32>
    %cst_142 = arith.constant dense<0.000000e+00> : vector<8x16xf32>
    %494 = tpu.matmul %483, %493, %cst_142 {dimension_numbers = #tpu.dot_dimension_numbers<[1], [0], [0], [1], [0, 0, 1, 1], [], []>} : vector<8x16xf32>, vector<16x16xf32>, vector<8x16xf32> -> vector<8x16xf32>
    %495 = arith.addf %492, %494 : vector<8x16xf32>
    %c0_143 = arith.constant 0 : index
    %c0_144 = arith.constant 0 : index
    %496 = vector.load %arg15[%c0_143, %c0_144] : memref<16x16xf32, #tpu.memory_space<vmem>>, vector<16x16xf32>
    %cst_145 = arith.constant dense<0.000000e+00> : vector<8x16xf32>
    %497 = tpu.matmul %485, %496, %cst_145 {dimension_numbers = #tpu.dot_dimension_numbers<[1], [0], [0], [1], [0, 0, 1, 1], [], []>} : vector<8x16xf32>, vector<16x16xf32>, vector<8x16xf32> -> vector<8x16xf32>
    %498 = arith.addf %495, %497 : vector<8x16xf32>
    %c0_146 = arith.constant 0 : index
    %c0_147 = arith.constant 0 : index
    %499 = vector.load %arg16[%c0_146, %c0_147] : memref<1x16xf32, #tpu.memory_space<vmem>>, vector<1x16xf32>
    %500 = vector.broadcast %499 : vector<1x16xf32> to vector<8x16xf32>
    %501 = arith.addf %498, %500 : vector<8x16xf32>
    %c0_148 = arith.constant 0 : index
    %c0_149 = arith.constant 0 : index
    %c0_150 = arith.constant 0 : index
    %502 = vector.load %arg17[%c0_148, %c0_149, %c0_150] : memref<1x8x16xf32, #tpu.memory_space<vmem>>, vector<1x8x16xf32>
    %503 = vector.shape_cast %502 : vector<1x8x16xf32> to vector<8x16xf32>
    %504 = vector.shape_cast %501 : vector<8x16xf32> to vector<1x8x16xf32>
    tpu.vector_store %arg17[%c0_148, %c0_149, %c0_150], %504 {strides = array<i32>} : memref<1x8x16xf32, #tpu.memory_space<vmem>>, vector<1x8x16xf32>,
    return
  }
  func.func @transform_0(%arg0: i32) -> (i32, i32, i32, i32) {
    %c0_i32 = arith.constant 0 : i32
    %c0_i32_0 = arith.constant 0 : i32
    %c0_i32_1 = arith.constant 0 : i32
    %c0_i32_2 = arith.constant 0 : i32
    return %arg0, %c0_i32, %c0_i32_0, %c0_i32_1 : i32, i32, i32, i32
  }
  func.func @transform_1(%arg0: i32) -> (i32, i32) {
    %c0_i32 = arith.constant 0 : i32
    %c0_i32_0 = arith.constant 0 : i32
    %c0_i32_1 = arith.constant 0 : i32
    return %c0_i32, %c0_i32_0 : i32, i32
  }
  func.func @transform_2(%arg0: i32) -> (i32, i32) {
    %c0_i32 = arith.constant 0 : i32
    %c0_i32_0 = arith.constant 0 : i32
    %c0_i32_1 = arith.constant 0 : i32
    return %c0_i32, %c0_i32_0 : i32, i32
  }
  func.func @transform_3(%arg0: i32) -> (i32, i32) {
    %c0_i32 = arith.constant 0 : i32
    %c0_i32_0 = arith.constant 0 : i32
    %c0_i32_1 = arith.constant 0 : i32
    return %c0_i32, %c0_i32_0 : i32, i32
  }
  func.func @transform_4(%arg0: i32) -> (i32, i32) {
    %c0_i32 = arith.constant 0 : i32
    %c0_i32_0 = arith.constant 0 : i32
    %c0_i32_1 = arith.constant 0 : i32
    return %c0_i32, %c0_i32_0 : i32, i32
  }
  func.func @transform_5(%arg0: i32) -> (i32, i32) {
    %c0_i32 = arith.constant 0 : i32
    %c0_i32_0 = arith.constant 0 : i32
    %c0_i32_1 = arith.constant 0 : i32
    return %c0_i32, %c0_i32_0 : i32, i32
  }
  func.func @transform_6(%arg0: i32) -> (i32, i32) {
    %c0_i32 = arith.constant 0 : i32
    %c0_i32_0 = arith.constant 0 : i32
    %c0_i32_1 = arith.constant 0 : i32
    return %c0_i32, %c0_i32_0 : i32, i32
  }
  func.func @transform_7(%arg0: i32) -> (i32, i32) {
    %c0_i32 = arith.constant 0 : i32
    %c0_i32_0 = arith.constant 0 : i32
    %c0_i32_1 = arith.constant 0 : i32
    return %c0_i32, %c0_i32_0 : i32, i32
  }
  func.func @transform_8(%arg0: i32) -> (i32, i32) {
    %c0_i32 = arith.constant 0 : i32
    %c0_i32_0 = arith.constant 0 : i32
    %c0_i32_1 = arith.constant 0 : i32
    return %c0_i32, %c0_i32_0 : i32, i32
  }
  func.func @transform_9(%arg0: i32) -> (i32, i32) {
    %c0_i32 = arith.constant 0 : i32
    %c0_i32_0 = arith.constant 0 : i32
    %c0_i32_1 = arith.constant 0 : i32
    return %c0_i32, %c0_i32_0 : i32, i32
  }
  func.func @transform_10(%arg0: i32) -> (i32, i32) {
    %c0_i32 = arith.constant 0 : i32
    %c0_i32_0 = arith.constant 0 : i32
    %c0_i32_1 = arith.constant 0 : i32
    return %c0_i32, %c0_i32_0 : i32, i32
  }
  func.func @transform_11(%arg0: i32) -> (i32, i32) {
    %c0_i32 = arith.constant 0 : i32
    %c0_i32_0 = arith.constant 0 : i32
    %c0_i32_1 = arith.constant 0 : i32
    return %c0_i32, %c0_i32_0 : i32, i32
  }
  func.func @transform_12(%arg0: i32) -> (i32, i32) {
    %c0_i32 = arith.constant 0 : i32
    %c0_i32_0 = arith.constant 0 : i32
    %c0_i32_1 = arith.constant 0 : i32
    return %c0_i32, %c0_i32_0 : i32, i32
  }
  func.func @transform_13(%arg0: i32) -> (i32, i32) {
    %c0_i32 = arith.constant 0 : i32
    %c0_i32_0 = arith.constant 0 : i32
    %c0_i32_1 = arith.constant 0 : i32
    return %c0_i32, %c0_i32_0 : i32, i32
  }
  func.func @transform_14(%arg0: i32) -> (i32, i32) {
    %c0_i32 = arith.constant 0 : i32
    %c0_i32_0 = arith.constant 0 : i32
    %c0_i32_1 = arith.constant 0 : i32
    return %c0_i32, %c0_i32_0 : i32, i32
  }
  func.func @transform_15(%arg0: i32) -> (i32, i32) {
    %c0_i32 = arith.constant 0 : i32
    %c0_i32_0 = arith.constant 0 : i32
    %c0_i32_1 = arith.constant 0 : i32
    return %c0_i32, %c0_i32_0 : i32, i32
  }
  func.func @transform_16(%arg0: i32) -> (i32, i32, i32) {
    %c0_i32 = arith.constant 0 : i32
    %c0_i32_0 = arith.constant 0 : i32
    %c0_i32_1 = arith.constant 0 : i32
    return %arg0, %c0_i32, %c0_i32_0 : i32, i32, i32
  }
}

</mosaic_0001>

<bundles_post_ra>
// kernel: paralle_st_gcn_t_forward.1
= control target key start
LH: loop header
LB: loop body
LE: loop exit
PB: predicated region body
PF: predicated region fallthrough
CT: control target
= control target key end

     0   :  { %s5915_s21 = smov 0   ;;  %s6513_s0 = inlined_call_operand.vmem [shape: f32[2,8,8,4], index: 0, kind: input, shape index: {}]   ;;  %s6514_s1 = inlined_call_operand.vmem [shape: f32[8,8], index: 1, kind: input, shape index: {}]   ;;  %s6515_s2 = inlined_call_operand.vmem [shape: f32[4,96], index: 2, kind: input, shape index: {}]   ;;  %s6516_s3 = inlined_call_operand.vmem [shape: f32[32,96], index: 3, kind: input, shape index: {}]   ;;  %s6517_s4 = inlined_call_operand.vmem [shape: f32[1,96], index: 4, kind: input, shape index: {}]   ;;  %s6518_s5 = inlined_call_operand.vmem [shape: f32[1,32], index: 5, kind: input, shape index: {}]   ;;  %s6519_s6 = inlined_call_operand.vmem [shape: f32[16,48], index: 6, kind: input, shape index: {}]   ;;  %s6520_s7 = inlined_call_operand.vmem [shape: f32[16,48], index: 7, kind: input, shape index: {}]   ;;  %s6521_s8 = inlined_call_operand.vmem [shape: f32[1,48], index: 8, kind: input, shape index: {}]   ;;  %s6522_s9 = inlined_call_operand.vmem [shape: f32[1,16], index: 9, kind: input, shape index: {}]   ;;  %s6523_s10 = inlined_call_operand.vmem [shape: f32[16,16], index: 10, kind: input, shape index: {}]   ;;  %s6524_s11 = inlined_call_operand.vmem [shape: f32[4,16], index: 11, kind: input, shape index: {}]   ;;  %s6525_s12 = inlined_call_operand.vmem [shape: f32[16,16], index: 12, kind: input, shape index: {}]   ;;  %s6526_s13 = inlined_call_operand.vmem [shape: f32[16,16], index: 13, kind: input, shape index: {}]   ;;  %s6527_s14 = inlined_call_operand.vmem [shape: f32[16,16], index: 14, kind: input, shape index: {}]   ;;  %s6528_s15 = inlined_call_operand.vmem [shape: f32[1,16], index: 15, kind: input, shape index: {}]   ;;  %s6529_s16 = inlined_call_operand.vmem [shape: f32[2,8,16], index: 16, kind: output, shape index: {}]  }
   0x1   :  { %6530 = sst [smem:[#allocation2_spill]] %s6513_s0 }
   0x2 LB: > { %s4980_s22 = sadd.s32 4294967295, %s5820_s21   ;;  %p4984_p0 = scmp.ge.s32.totalorder %s5820_s21, 1  ;;  %s5820_s21 = sphi %s5915_s21, %s26_s21  }
   0x3   : > { %p462_p1 = scmp.lt.s32.totalorder %s5820_s21, 3 }
   0x5   : > { %p463_p2 = pnand %p4984_p0, %p462_p1 }
   0x6   : > { %p511_p3 = scmp.lt.s32.totalorder (!%p463_p2), %s4980_s22, 1  ;;  %vm614_vm0 = vcmask (!%p463_p2), 1043456   ;;  %v5822_v0 = vmov (!%p463_p2), 0.0   ;;  %vm5823_vm1 = vmmov (!%p463_p2), 0   ;;  %v5929_v1 = vld [vmem:[%s6524_s11] sm:$0xf] (!%p463_p2) }
   0x7   : > { %466 = sbr.rel (%p463_p2) target bundleno = 6429 (0x191d), region = 84  ;;  %5236 = vmatprep.subr.mxu0 (!%p463_p2), %v5822_v0  ;;  %5238 = vmatprep.mubr.msk.f32.mxu0 (!%p463_p2), %vm5823_vm1, %v5822_v0  ;;  %s6531_s28 = sld [smem:[#allocation2_spill]] (!%p463_p2)  ;;  %v5947_v2 = vld [vmem:[%s6514_s1] sm:$0xff] (!%p463_p2)  ;;  %vm536_vm2 = vcmask (!%p463_p2), 64512   ;;  %v5824_v4 = vmov (!%p463_p2), 0.0|0.0   ;;  %vm610_vm3 = vcmask (!%p463_p2), 31744  }
   0x8   : > { %5241 = vmatprep.subr.mxu1 (!%p463_p2), %v5822_v0  ;;  %5243 = vmatprep.mubr.msk.f32.mxu1 (!%p463_p2), %vm5823_vm1, %v5822_v0  ;;  %v5959_v5 = vld [vmem:[%s6515_s2] sm:$0xf] (!%p463_p2)  ;;  %s5825_s23 = smov (!%p463_p2), 64   ;;  %v523_v8 = vld [vmem:[%s6516_s3 + $0x8] sm:$0xff] (!%p463_p2)  ;;  %v524_v10 = vld [vmem:[%s6516_s3 + $0x10] sm:$0xff] (!%p463_p2)  ;;  %vm886_vm4 = vcmask (!%p463_p2), 130048  }
   0x9   : > { %5242 = vmatpush3.msk.msra.mxu1 (!%p463_p2), %vm614_vm0, %v5929_v1  ;;  %v4995_v6 = vld [vmem:[%s6518_s5] ss:$0 sm:$0xff] (!%p463_p2)  ;;  %v525_v11 = vld [vmem:[%s6516_s3 + $0x18] sm:$0xff] (!%p463_p2)  ;;  %v529_v16 = vld [vmem:[%s6519_s6 + $0x8] sm:$0xff] (!%p463_p2)  ;;  %s5826_s17 = smov (!%p463_p2), 96   ;;  %s5827_s20 = smov (!%p463_p2), 32  }
   0xa   : > { %5589 = vmatprep.subr.bf16.mxu1 (!%p463_p2), %v5824_v4  ;;  %857 = vrot.lane.b32.xlu0 (!%p463_p2), %v4995_v6, %s5825_s23  ;;  %v522_v7 = vld [vmem:[%s6516_s3] sm:$0xff] (!%p463_p2)  ;;  %v5987_v14 = vpack.c.bf16 (!%p463_p2), %v525_v11, %v524_v10  ;;  %v531_v21 = vld [vmem:[%s6520_s7 + $0x8] sm:$0xff] (!%p463_p2)  ;;  %vm771_vm5 = vcmask (!%p463_p2), 261120   ;;  %s5828_s26 = smov (!%p463_p2), 112   ;;  %s5829_s24 = smov (!%p463_p2), 80  }
   0xb   : > { %v5977_v9 = vpack.c.bf16 (!%p463_p2), %v523_v8, %v522_v7  ;;  %v528_v15 = vld [vmem:[%s6519_s6] sm:$0xff] (!%p463_p2) }
   0xc   : > { %v6003_v17 = vpack.c.bf16 (!%p463_p2), %v529_v16, %v528_v15  ;;  %v530_v20 = vld [vmem:[%s6520_s7] sm:$0xff] (!%p463_p2) }
   0xd   : > { %v6013_v23 = vpack.c.bf16 (!%p463_p2), %v531_v21, %v530_v20  ;;  %v6033_v30 = vld [vmem:[%s6517_s4] ss:$0 sm:$0xff] (!%p463_p2) }
   0xe   : > { %s6533_s22 = smov (!%p511_p3, %s4980_s22), 1  ;;  %v4999_v47 = vld [vmem:[%s6522_s9] ss:$0 sm:$0xff] }
   0xf   : > { %s5085_s25 = sshll.u32 %s6533_s22, 6  ;;  %v6074_v57 = vld [vmem:[%s6521_s8] ss:$0 sm:$0xff] }
  0x10   : > { %s5942_s29 = scalar_lea.vmem %s6531_s28, %s5085_s25 }
  0x11   : > { %v535_v3 = vld [vmem:[%s5942_s29] sm:$0xff]  ;;  %v5000_v39 = vld [vmem:[%s5942_s29 + $0x8] sm:$0xff] }
  0x12   : > { %5237 = vmatpush3.msra.mxu0 %v535_v3 }
  0x13   : > { %5239 = vmatmul.mubr.msk.f32.vlgmr.msra.gmra.mrb[0].mxu0 %vm536_vm2, %v5947_v2  ;;  %5246 = vmatprep.subr.mxu0 %v5822_v0 }
  0x14   : > { %5248 = vmatprep.mubr.msk.f32.mxu0 %vm5823_vm1, %v5822_v0  ;;  %5247 = vmatpush3.msk.msra.mxu0 %vm614_vm0, %v5959_v5 }
  0x15   : > { %5595 = vmatprep.subr.bf16.mxu0 %v5824_v4 }
  0x17   : > { %5249 = vmatmul.mubr.msk.f32.vlgmr.msra.gmra.mrb[2].mxu0 %vm610_vm3, %v535_v3 }
  0x18   : > { %5266 = vmatprep.mubr.msk.f32.mxu0 %vm5823_vm1, %v5822_v0  ;;  %5597 = vmatpush3.bf16.msra.mxu0 %v6003_v17 }
  0x19   : > { %5598 = vmatprep.subr.bf16.mxu0 %v5824_v4 }
  0x7c   : > { %v6020_v26 = vpop.permute.xlu0 %857 }
  0xe6   : > { %v606_v12 = vpop.f32.mrb[0].mxu0 }
  0xe7   : > { %v5240_v13 = vpop.f32.mrb[1].mxu0  ;;  %5244 = vmatmul.mubr.msk.f32.vlgmr.msra.gmra.mrb[0].mxu1 %vm610_vm3, %v606_v12 }
  0xe8   : > { %5591 = vmatpush3.bf16.msra.mxu1 %v5977_v9  ;;  %5259 = vmatprep.mubr.msk.f32.mxu1 %vm5823_vm1, %v5822_v0 }
  0xe9   : > { %5592 = vmatprep.subr.bf16.mxu1 %v5824_v4 }
  0xea   : > { %v767_v18 = vpop.f32.mrb[2].mxu0 }
  0xeb   : > { %v5250_v19 = vpop.f32.mrb[3].mxu0  ;;  %v768_v31 = vadd.f32 %v6033_v30, %v767_v18 }
  0xec   : > { %5594 = vmatpush3.bf16.msra.mxu1 %v5987_v14 }
  0xed   : > { %5276 = vmatprep.subr.mxu1 %v5822_v0 }
  0xef   : > { %5260 = vmatmul.mubr.f32.vlgmr.msra.gmra.mrb[2].mxu1 %v5822_v0 }
  0xf0   : > { %5278 = vmatprep.mubr.msk.f32.mxu1 %vm5823_vm1, %v5822_v0  ;;  %5277 = vmatpush3.msra.mxu1 %v5000_v39 }
  0xf1   : > { %5286 = vmatprep.subr.mxu1 %v5822_v0 }
  0xf3   : > { %5279 = vmatmul.mubr.msk.f32.vlgmr.msra.gmra.mrb[4].mxu1 %vm536_vm2, %v5947_v2 }
  0xf4   : > { %5287 = vmatpush3.msk.msra.mxu1 %vm614_vm0, %v5959_v5  ;;  %5288 = vmatprep.mubr.msk.f32.mxu1 %vm5823_vm1, %v5822_v0 }
  0xf5   : > { %5607 = vmatprep.subr.bf16.mxu1 %v5824_v4 }
  0xf7   : > { %5289 = vmatmul.mubr.msk.f32.vlgmr.msra.gmra.mrb[6].mxu1 %vm610_vm3, %v5000_v39 }
  0xf8   : > { %5609 = vmatpush3.bf16.msra.mxu1 %v6003_v17  ;;  %5306 = vmatprep.mubr.msk.f32.mxu1 %vm5823_vm1, %v5822_v0 }
  0xf9   : > { %5610 = vmatprep.subr.bf16.mxu1 %v5824_v4 }
 0x1ba   : > { %v684_v22 = vpop.f32.mrb[0].mxu1 }
 0x1bb   : > { %v688_v24 = vmax.f32 %v684_v22, 0.0  ;;  %v5245_v25 = vpop.f32.mrb[1].mxu1 }
 0x1bd   : > { %5267 = vmatmul.mubr.msk.f32.vlgmr.msra.gmra.mrb[4].mxu0 %vm886_vm4, %v688_v24 }
 0x1be   : > { %5600 = vmatpush3.bf16.msra.mxu0 %v6013_v23  ;;  %5273 = vmatprep.mubr.msk.f32.mxu0 %vm5823_vm1, %v5822_v0 }
 0x1bf   : > { %5281 = vmatprep.subr.mxu0 %v5822_v0 }
 0x1c1   : > { %5274 = vmatmul.mubr.f32.vlgmr.msra.gmra.mrb[6].mxu0 %v5822_v0 }
 0x1c2   : > { %v841_v27 = vpop.f32.mrb[2].mxu1  ;;  %5282 = vmatpush3.msk.msra.mxu0 %vm614_vm0, %v5929_v1  ;;  %5283 = vmatprep.mubr.msk.f32.mxu0 %vm5823_vm1, %v5822_v0 }
 0x1c3   : > { %v860_v28 = vadd.f32 %v6020_v26, %v841_v27  ;;  %v5261_v29 = vpop.f32.mrb[3].mxu1  ;;  %5601 = vmatprep.subr.bf16.mxu0 %v5824_v4  ;;  %v845_v32 = vadd.f32 %v841_v27, %v768_v31 }
 0x1c5   : > { %862 = vrot.lane.b32.xlu0 %v860_v28, %s5825_s23  ;;  %v4994_v33 = vmul.f32 -1.442695, %v845_v32 }
 0x1c6   : > { %v1135_v48 = vpop.f32.mrb[4].mxu1 }
 0x1c7   : > { %5713 = vpow2.f32 %v4994_v33  ;;  %v5280_v49 = vpop.f32.mrb[5].mxu1  ;;  %5284 = vmatmul.mubr.msk.f32.vlgmr.msra.gmra.mrb[8].mxu0 %vm610_vm3, %v1135_v48 }
 0x1c8   : > { %5603 = vmatpush3.bf16.msra.mxu0 %v5977_v9  ;;  %5299 = vmatprep.mubr.msk.f32.mxu0 %vm5823_vm1, %v5822_v0 }
 0x1c9   : > { %5604 = vmatprep.subr.bf16.mxu0 %v5824_v4 }
 0x1ca   : > { %v1282_v8 = vpop.f32.mrb[6].mxu1 }
 0x1cb   : > { %v5290_v10 = vpop.f32.mrb[7].mxu1  ;;  %v1283_v32 = vadd.f32 %v6033_v30, %v1282_v8 }
 0x1cc   : > { %5606 = vmatpush3.bf16.msra.mxu0 %v5987_v14 }
 0x1cd   : > { %5316 = vmatprep.subr.mxu0 %v5822_v0 }
 0x1d1   : > { %v5714_v34 = vpop.eup %5713 }
 0x1d2   : > { %v849_v35 = vadd.f32 1.0, %v5714_v34 }
 0x1d4   : > { %5715 = vrcp.f32 %v849_v35 }
 0x1de   : > { %v5716_v36 = vpop.eup %5715 }
 0x1df   : > { %v872_v50 = vsub.f32 1.0, %v5716_v36  ;;  %v878_v52 = vmul.f32 0.0, %v5716_v36 }
 0x237   : > { %v863_v37 = vpop.permute.xlu0 %862 }
 0x238   : > { %v865_v38 = vmul.f32 %v5716_v36, %v863_v37 }
 0x23a   : > { %867 = vrot.lane.b32.xlu1 %v865_v38, %s5825_s23 }
 0x290   : > { %v956_v40 = vpop.f32.mrb[4].mxu0 }
 0x291   : > { %v5268_v41 = vpop.f32.mrb[5].mxu0  ;;  %v957_v58 = vadd.f32 %v6074_v57, %v956_v40  ;;  %v5011_v40 = vld [vmem:[%s5942_s29 + $0x10] sm:$0xff] }
 0x294   : > { %v1028_v42 = vpop.f32.mrb[6].mxu0 }
 0x295   : > { %v5275_v43 = vpop.f32.mrb[7].mxu0  ;;  %v1032_v59 = vadd.f32 %v1028_v42, %v957_v58 }
 0x297   : > { %v4998_v60 = vmul.f32 -1.442695, %v1032_v59 }
 0x29a   : > { %v1208_v11 = vpop.f32.mrb[8].mxu0 }
 0x29b   : > { %v1212_v12 = vmax.f32 %v1208_v11, 0.0  ;;  %v5285_v13 = vpop.f32.mrb[9].mxu0 }
 0x29d   : > { %5307 = vmatmul.mubr.msk.f32.vlgmr.msra.gmra.mrb[8].mxu1 %vm886_vm4, %v1212_v12 }
 0x29e   : > { %5612 = vmatpush3.bf16.msra.mxu1 %v6013_v23  ;;  %5313 = vmatprep.mubr.msk.f32.mxu1 %vm5823_vm1, %v5822_v0 }
 0x29f   : > { %5321 = vmatprep.subr.mxu1 %v5822_v0 }
 0x2ac   : > { %v868_v44 = vpop.permute.xlu1 %867 }
 0x2ad   : > { %v870_v45 = vadd.f32 %v868_v44, %v768_v31 }
 0x2af   : > { %5717 = vtanh.f32 %v870_v45 }
 0x2b0   : > { %5719 = vpow2.f32 %v4998_v60 }
 0x2b9   : > { %v5718_v46 = vpop.eup %5717 }
 0x2ba   : > { %874 = vrot.lane.b32.xlu1 %v5718_v46, %s5826_s17  ;;  %v5720_v61 = vpop.eup %5719 }
 0x2bb   : > { %v1036_v62 = vadd.f32 1.0, %v5720_v61 }
 0x2bd   : > { %5721 = vrcp.f32 %v1036_v62 }
 0x2be   : > { %1044 = vrot.lane.b32.xlu1 %v4999_v47, %s5827_s20 }
 0x2c7   : > { %v5722_v3 = vpop.eup %5721 }
 0x2c8   : > { %v1059_v22 = vsub.f32 1.0, %v5722_v3  ;;  %v1065_v25 = vmul.f32 0.0, %v5722_v3 }
 0x32c   : > { %v875_v51 = vpop.permute.xlu1 %874 }
 0x32d   : > { %v877_v53 = vmul.f32 %v875_v51, %v872_v50 }
 0x32f   : > { %v6063_v54 = vadd.f32 %v878_v52, %v877_v53 }
 0x330   : > { %v6065_v55 = vpop.permute.xlu1 %1044 }
 0x331   : > { %1287 = vrot.lane.b32.xlu0 %v6063_v54, %s5826_s17  ;;  %v1047_v56 = vadd.f32 %v6065_v55, %v1028_v42 }
 0x335   : > { %1049 = vrot.lane.b32.xlu0 %v1047_v56, %s5826_s17 }
 0x370   : > { %v1457_v29 = vpop.f32.mrb[8].mxu1 }
 0x371   : > { %v5308_v31 = vpop.f32.mrb[9].mxu1 }
 0x3a3   : > { %v1288_v63 = vpop.permute.xlu0 %1287 }
 0x3a4   : > { %5300 = vmatmul.mubr.msk.f32.vlgmr.msra.gmra.mrb[10].mxu0 %vm771_vm5, %v1288_v63 }
 0x3a5   : > { %5318 = vmatprep.mubr.msk.f32.mxu0 %vm5823_vm1, %v5822_v0  ;;  %5317 = vmatpush3.msra.mxu0 %v5011_v40 }
 0x3a6   : > { %5326 = vmatprep.subr.mxu0 %v5822_v0 }
 0x3a7   : > { %v1050_v6 = vpop.permute.xlu0 %1049 }
 0x3a8   : > { %v1052_v7 = vmul.f32 %v5722_v3, %v1050_v6  ;;  %5319 = vmatmul.mubr.msk.f32.vlgmr.msra.gmra.mrb[12].mxu0 %vm536_vm2, %v5947_v2 }
 0x3a9   : > { %5327 = vmatpush3.msk.msra.mxu0 %vm614_vm0, %v5959_v5  ;;  %5328 = vmatprep.mubr.msk.f32.mxu0 %vm5823_vm1, %v5822_v0 }
 0x3aa   : > { %1054 = vrot.lane.b32.xlu0 %v1052_v7, %s5827_s20  ;;  %5619 = vmatprep.subr.bf16.mxu0 %v5824_v4 }
 0x3ac   : > { %5329 = vmatmul.mubr.msk.f32.vlgmr.msra.gmra.mrb[14].mxu0 %vm610_vm3, %v5011_v40 }
 0x3ad   : > { %5621 = vmatpush3.bf16.msra.mxu0 %v6003_v17  ;;  %5346 = vmatprep.mubr.msk.f32.mxu0 %vm5823_vm1, %v5822_v0 }
 0x3ae   : > { %5622 = vmatprep.subr.bf16.mxu0 %v5824_v4 }
 0x41c   : > { %v1055_v15 = vpop.permute.xlu0 %1054 }
 0x41d   : > { %v1057_v16 = vadd.f32 %v1055_v15, %v957_v58  ;;  %v1458_v58 = vadd.f32 %v6074_v57, %v1457_v29 }
 0x41f   : > { %5723 = vtanh.f32 %v1057_v16 }
 0x429   : > { %v5724_v18 = vpop.eup %5723 }
 0x42a   : > { %1061 = vrot.lane.b32.xlu0 %v5724_v18, %s5828_s26 }
 0x477   : > { %v1357_v19 = vpop.f32.mrb[10].mxu0 }
 0x478   : > { %v1368_v20 = vadd.f32 %v1357_v19, %v6020_v26  ;;  %v5301_v21 = vpop.f32.mrb[11].mxu0  ;;  %v1361_v33 = vadd.f32 %v1357_v19, %v1283_v32 }
 0x47a   : > { %1370 = vrot.lane.b32.xlu1 %v1368_v20, %s5825_s23  ;;  %v5007_v34 = vmul.f32 -1.442695, %v1361_v33 }
 0x47b   : > { %v1631_v45 = vpop.f32.mrb[12].mxu0 }
 0x47c   : > { %5725 = vpow2.f32 %v5007_v34  ;;  %v5320_v46 = vpop.f32.mrb[13].mxu0 }
 0x47f   : > { %v1778_v7 = vpop.f32.mrb[14].mxu0 }
 0x480   : > { %v5330_v8 = vpop.f32.mrb[15].mxu0 }
 0x486   : > { %v5726_v35 = vpop.eup %5725 }
 0x487   : > { %v1365_v36 = vadd.f32 1.0, %v5726_v35 }
 0x489   : > { %5727 = vrcp.f32 %v1365_v36 }
 0x493   : > { %v5728_v37 = vpop.eup %5727 }
 0x494   : > { %v1380_v47 = vsub.f32 1.0, %v5728_v37  ;;  %v1386_v49 = vmul.f32 %v5728_v37, %v6063_v54 }
 0x49c   : > { %v1062_v24 = vpop.permute.xlu0 %1061 }
 0x49d   : > { %v1064_v27 = vmul.f32 %v1062_v24, %v1059_v22 }
 0x49f   : > { %v6089_v28 = vadd.f32 %v1065_v25, %v1064_v27 }
 0x4a1   : > { %1462 = vrot.lane.b32.xlu0 %v6089_v28, %s5828_s26 }
 0x4ec   : > { %v1371_v38 = vpop.permute.xlu1 %1370 }
 0x4ed   : > { %v1373_v39 = vmul.f32 %v5728_v37, %v1371_v38 }
 0x4ef   : > { %1375 = vrot.lane.b32.xlu1 %v1373_v39, %s5825_s23  ;;  %v5022_v39 = vld [vmem:[%s5942_s29 + $0x18] sm:$0xff] }
 0x513   : > { %v1463_v41 = vpop.permute.xlu0 %1462 }
 0x514   : > { %5314 = vmatmul.mubr.msk.f32.vlgmr.msra.gmra.mrb[10].mxu1 %vm886_vm4, %v1463_v41 }
 0x515   : > { %5322 = vmatpush3.msk.msra.mxu1 %vm614_vm0, %v5929_v1  ;;  %5323 = vmatprep.mubr.msk.f32.mxu1 %vm5823_vm1, %v5822_v0 }
 0x516   : > { %5613 = vmatprep.subr.bf16.mxu1 %v5824_v4 }
 0x518   : > { %5324 = vmatmul.mubr.msk.f32.vlgmr.msra.gmra.mrb[12].mxu1 %vm610_vm3, %v1631_v45 }
 0x519   : > { %5615 = vmatpush3.bf16.msra.mxu1 %v5977_v9  ;;  %5339 = vmatprep.mubr.msk.f32.mxu1 %vm5823_vm1, %v5822_v0 }
 0x51a   : > { %5616 = vmatprep.subr.bf16.mxu1 %v5824_v4 }
 0x51d   : > { %5618 = vmatpush3.bf16.msra.mxu1 %v5987_v14 }
 0x51e   : > { %5356 = vmatprep.subr.mxu1 %v5822_v0 }
 0x561   : > { %v1376_v42 = vpop.permute.xlu1 %1375 }
 0x562   : > { %v1378_v43 = vadd.f32 %v1376_v42, %v1283_v32  ;;  %v1779_v32 = vadd.f32 %v6033_v30, %v1778_v7 }
 0x564   : > { %5729 = vtanh.f32 %v1378_v43 }
 0x56e   : > { %v5730_v44 = vpop.eup %5729 }
 0x56f   : > { %1382 = vrot.lane.b32.xlu1 %v5730_v44, %s5826_s17 }
 0x5e1   : > { %v1383_v48 = vpop.permute.xlu1 %1382 }
 0x5e2   : > { %v1385_v50 = vmul.f32 %v1383_v48, %v1380_v47 }
 0x5e4   : > { %v6124_v51 = vadd.f32 %v1386_v49, %v1385_v50 }
 0x5e6   : > { %1783 = vrot.lane.b32.xlu1 %v6124_v51, %s5826_s17 }
 0x5e7   : > { %v1532_v52 = vpop.f32.mrb[10].mxu1 }
 0x5e8   : > { %v1543_v53 = vadd.f32 %v1532_v52, %v6065_v55  ;;  %v5315_v56 = vpop.f32.mrb[11].mxu1  ;;  %v1536_v59 = vadd.f32 %v1532_v52, %v1458_v58 }
 0x5ea   : > { %1545 = vrot.lane.b32.xlu0 %v1543_v53, %s5826_s17  ;;  %v5010_v60 = vmul.f32 -1.442695, %v1536_v59 }
 0x5eb   : > { %v1704_v10 = vpop.f32.mrb[12].mxu1 }
 0x5ec   : > { %5731 = vpow2.f32 %v5010_v60  ;;  %v1708_v11 = vmax.f32 %v1704_v10, 0.0  ;;  %v5325_v12 = vpop.f32.mrb[13].mxu1 }
 0x5ee   : > { %5347 = vmatmul.mubr.msk.f32.vlgmr.msra.gmra.mrb[16].mxu0 %vm886_vm4, %v1708_v11 }
 0x5ef   : > { %5624 = vmatpush3.bf16.msra.mxu0 %v6013_v23  ;;  %5353 = vmatprep.mubr.msk.f32.mxu0 %vm5823_vm1, %v5822_v0 }
 0x5f0   : > { %5361 = vmatprep.subr.mxu0 %v5822_v0 }
 0x5f6   : > { %v5732_v61 = vpop.eup %5731 }
 0x5f7   : > { %v1540_v62 = vadd.f32 1.0, %v5732_v61 }
 0x5f9   : > { %5733 = vrcp.f32 %v1540_v62 }
 0x603   : > { %v5734_v63 = vpop.eup %5733 }
 0x604   : > { %v1555_v21 = vsub.f32 1.0, %v5734_v63  ;;  %v1561_v24 = vmul.f32 %v5734_v63, %v6089_v28 }
 0x658   : > { %v1784_v54 = vpop.permute.xlu1 %1783 }
 0x659   : > { %5340 = vmatmul.mubr.msk.f32.vlgmr.msra.gmra.mrb[14].mxu1 %vm771_vm5, %v1784_v54 }
 0x65a   : > { %5358 = vmatprep.mubr.msk.f32.mxu1 %vm5823_vm1, %v5822_v0  ;;  %5357 = vmatpush3.msra.mxu1 %v5022_v39 }
 0x65b   : > { %5366 = vmatprep.subr.mxu1 %v5822_v0 }
 0x65c   : > { %v1546_v3 = vpop.permute.xlu0 %1545 }
 0x65d   : > { %v1548_v6 = vmul.f32 %v5734_v63, %v1546_v3  ;;  %5359 = vmatmul.mubr.msk.f32.vlgmr.msra.gmra.mrb[16].mxu1 %vm536_vm2, %v5947_v2 }
 0x65e   : > { %5367 = vmatpush3.msk.msra.mxu1 %vm614_vm0, %v5959_v5  ;;  %5368 = vmatprep.mubr.msk.f32.mxu1 %vm5823_vm1, %v5822_v0 }
 0x65f   : > { %1550 = vrot.lane.b32.xlu0 %v1548_v6, %s5827_s20  ;;  %5631 = vmatprep.subr.bf16.mxu1 %v5824_v4 }
 0x661   : > { %5369 = vmatmul.mubr.msk.f32.vlgmr.msra.gmra.mrb[18].mxu1 %vm610_vm3, %v5022_v39 }
 0x662   : > { %5633 = vmatpush3.bf16.msra.mxu1 %v6003_v17  ;;  %5386 = vmatprep.mubr.msk.f32.mxu1 %vm5823_vm1, %v5822_v0 }
 0x663   : > { %5634 = vmatprep.subr.bf16.mxu1 %v5824_v4 }
 0x6c1   : > { %v1953_v29 = vpop.f32.mrb[16].mxu0 }
 0x6c2   : > { %v5348_v31 = vpop.f32.mrb[17].mxu0 }
 0x6d1   : > { %v1551_v13 = vpop.permute.xlu0 %1550 }
 0x6d2   : > { %v1553_v15 = vadd.f32 %v1551_v13, %v1458_v58  ;;  %v1954_v58 = vadd.f32 %v6074_v57, %v1953_v29 }
 0x6d4   : > { %5735 = vtanh.f32 %v1553_v15 }
 0x6de   : > { %v5736_v16 = vpop.eup %5735 }
 0x6df   : > { %1557 = vrot.lane.b32.xlu0 %v5736_v16, %s5828_s26 }
 0x72c   : > { %v1853_v18 = vpop.f32.mrb[14].mxu1 }
 0x72d   : > { %v1864_v19 = vadd.f32 %v1853_v18, %v6020_v26  ;;  %v5341_v20 = vpop.f32.mrb[15].mxu1  ;;  %v1857_v33 = vadd.f32 %v1853_v18, %v1779_v32 }
 0x72f   : > { %1866 = vrot.lane.b32.xlu1 %v1864_v19, %s5825_s23  ;;  %v5018_v34 = vmul.f32 -1.442695, %v1857_v33 }
 0x730   : > { %v2127_v44 = vpop.f32.mrb[16].mxu1 }
 0x731   : > { %5737 = vpow2.f32 %v5018_v34  ;;  %v5360_v45 = vpop.f32.mrb[17].mxu1 }
 0x734   : > { %v2274_v6 = vpop.f32.mrb[18].mxu1 }
 0x735   : > { %v5370_v7 = vpop.f32.mrb[19].mxu1 }
 0x73b   : > { %v5738_v35 = vpop.eup %5737 }
 0x73c   : > { %v1861_v36 = vadd.f32 1.0, %v5738_v35 }
 0x73e   : > { %5739 = vrcp.f32 %v1861_v36 }
 0x748   : > { %v5740_v37 = vpop.eup %5739 }
 0x749   : > { %v1876_v46 = vsub.f32 1.0, %v5740_v37  ;;  %v1882_v48 = vmul.f32 %v5740_v37, %v6124_v51 }
 0x751   : > { %v1558_v22 = vpop.permute.xlu0 %1557 }
 0x752   : > { %v1560_v25 = vmul.f32 %v1558_v22, %v1555_v21 }
 0x754   : > { %v6144_v27 = vadd.f32 %v1561_v24, %v1560_v25 }
 0x756   : > { %1958 = vrot.lane.b32.xlu0 %v6144_v27, %s5828_s26 }
 0x7a1   : > { %v1867_v38 = vpop.permute.xlu1 %1866 }
 0x7a2   : > { %v1869_v28 = vmul.f32 %v5740_v37, %v1867_v38 }
 0x7a4   : > { %1871 = vrot.lane.b32.xlu1 %v1869_v28, %s5825_s23  ;;  %v5033_v28 = vld [vmem:[%s5942_s29 + $0x20] sm:$0xff] }
 0x7c8   : > { %v1959_v40 = vpop.permute.xlu0 %1958 }
 0x7c9   : > { %5354 = vmatmul.mubr.msk.f32.vlgmr.msra.gmra.mrb[18].mxu0 %vm886_vm4, %v1959_v40 }
 0x7ca   : > { %5362 = vmatpush3.msk.msra.mxu0 %vm614_vm0, %v5929_v1  ;;  %5363 = vmatprep.mubr.msk.f32.mxu0 %vm5823_vm1, %v5822_v0 }
 0x7cb   : > { %5625 = vmatprep.subr.bf16.mxu0 %v5824_v4 }
 0x7cd   : > { %5364 = vmatmul.mubr.msk.f32.vlgmr.msra.gmra.mrb[20].mxu0 %vm610_vm3, %v2127_v44 }
 0x7ce   : > { %5627 = vmatpush3.bf16.msra.mxu0 %v5977_v9  ;;  %5379 = vmatprep.mubr.msk.f32.mxu0 %vm5823_vm1, %v5822_v0 }
 0x7cf   : > { %5628 = vmatprep.subr.bf16.mxu0 %v5824_v4 }
 0x7d2   : > { %5630 = vmatpush3.bf16.msra.mxu0 %v5987_v14 }
 0x7d3   : > { %5396 = vmatprep.subr.mxu0 %v5822_v0 }
 0x816   : > { %v1872_v41 = vpop.permute.xlu1 %1871 }
 0x817   : > { %v1874_v42 = vadd.f32 %v1872_v41, %v1779_v32  ;;  %v2275_v32 = vadd.f32 %v6033_v30, %v2274_v6 }
 0x819   : > { %5741 = vtanh.f32 %v1874_v42 }
 0x823   : > { %v5742_v43 = vpop.eup %5741 }
 0x824   : > { %1878 = vrot.lane.b32.xlu1 %v5742_v43, %s5826_s17 }
 0x896   : > { %v1879_v47 = vpop.permute.xlu1 %1878 }
 0x897   : > { %v1881_v49 = vmul.f32 %v1879_v47, %v1876_v46 }
 0x899   : > { %v6179_v50 = vadd.f32 %v1882_v48, %v1881_v49 }
 0x89b   : > { %2279 = vrot.lane.b32.xlu1 %v6179_v50, %s5826_s17 }
 0x89c   : > { %v2028_v52 = vpop.f32.mrb[18].mxu0 }
 0x89d   : > { %v2039_v53 = vadd.f32 %v2028_v52, %v6065_v55  ;;  %v5355_v56 = vpop.f32.mrb[19].mxu0  ;;  %v2032_v59 = vadd.f32 %v2028_v52, %v1954_v58 }
 0x89f   : > { %2041 = vrot.lane.b32.xlu0 %v2039_v53, %s5826_s17  ;;  %v5021_v60 = vmul.f32 -1.442695, %v2032_v59 }
 0x8a0   : > { %v2200_v8 = vpop.f32.mrb[20].mxu0 }
 0x8a1   : > { %5743 = vpow2.f32 %v5021_v60  ;;  %v2204_v10 = vmax.f32 %v2200_v8, 0.0  ;;  %v5365_v11 = vpop.f32.mrb[21].mxu0 }
 0x8a3   : > { %5387 = vmatmul.mubr.msk.f32.vlgmr.msra.gmra.mrb[20].mxu1 %vm886_vm4, %v2204_v10 }
 0x8a4   : > { %5636 = vmatpush3.bf16.msra.mxu1 %v6013_v23  ;;  %5393 = vmatprep.mubr.msk.f32.mxu1 %vm5823_vm1, %v5822_v0 }
 0x8a5   : > { %5401 = vmatprep.subr.mxu1 %v5822_v0 }
 0x8ab   : > { %v5744_v61 = vpop.eup %5743 }
 0x8ac   : > { %v2036_v62 = vadd.f32 1.0, %v5744_v61 }
 0x8ae   : > { %5745 = vrcp.f32 %v2036_v62 }
 0x8b8   : > { %v5746_v54 = vpop.eup %5745 }
 0x8b9   : > { %v2051_v20 = vsub.f32 1.0, %v5746_v54  ;;  %v2057_v22 = vmul.f32 %v5746_v54, %v6144_v27 }
 0x90d   : > { %v2280_v51 = vpop.permute.xlu1 %2279 }
 0x90e   : > { %5380 = vmatmul.mubr.msk.f32.vlgmr.msra.gmra.mrb[22].mxu0 %vm771_vm5, %v2280_v51 }
 0x90f   : > { %5398 = vmatprep.mubr.msk.f32.mxu0 %vm5823_vm1, %v5822_v0  ;;  %5397 = vmatpush3.msra.mxu0 %v5033_v28 }
 0x910   : > { %5406 = vmatprep.subr.mxu0 %v5822_v0 }
 0x911   : > { %v2042_v63 = vpop.permute.xlu0 %2041 }
 0x912   : > { %v2044_v3 = vmul.f32 %v5746_v54, %v2042_v63  ;;  %5399 = vmatmul.mubr.msk.f32.vlgmr.msra.gmra.mrb[24].mxu0 %vm536_vm2, %v5947_v2 }
 0x913   : > { %5407 = vmatpush3.msk.msra.mxu0 %vm614_vm0, %v5959_v5  ;;  %5408 = vmatprep.mubr.msk.f32.mxu0 %vm5823_vm1, %v5822_v0 }
 0x914   : > { %2046 = vrot.lane.b32.xlu0 %v2044_v3, %s5827_s20  ;;  %5643 = vmatprep.subr.bf16.mxu0 %v5824_v4 }
 0x916   : > { %5409 = vmatmul.mubr.msk.f32.vlgmr.msra.gmra.mrb[26].mxu0 %vm610_vm3, %v5033_v28 }
 0x917   : > { %5645 = vmatpush3.bf16.msra.mxu0 %v6003_v17  ;;  %5426 = vmatprep.mubr.msk.f32.mxu0 %vm5823_vm1, %v5822_v0 }
 0x918   : > { %5646 = vmatprep.subr.bf16.mxu0 %v5824_v4 }
 0x976   : > { %v2449_v29 = vpop.f32.mrb[20].mxu1 }
 0x977   : > { %v5388_v31 = vpop.f32.mrb[21].mxu1 }
 0x986   : > { %v2047_v12 = vpop.permute.xlu0 %2046 }
 0x987   : > { %v2049_v13 = vadd.f32 %v2047_v12, %v1954_v58  ;;  %v2450_v58 = vadd.f32 %v6074_v57, %v2449_v29 }
 0x989   : > { %5747 = vtanh.f32 %v2049_v13 }
 0x993   : > { %v5748_v15 = vpop.eup %5747 }
 0x994   : > { %2053 = vrot.lane.b32.xlu0 %v5748_v15, %s5828_s26 }
 0x9e1   : > { %v2349_v16 = vpop.f32.mrb[22].mxu0 }
 0x9e2   : > { %v2360_v18 = vadd.f32 %v2349_v16, %v6020_v26  ;;  %v5381_v19 = vpop.f32.mrb[23].mxu0  ;;  %v2353_v33 = vadd.f32 %v2349_v16, %v2275_v32 }
 0x9e4   : > { %2362 = vrot.lane.b32.xlu1 %v2360_v18, %s5825_s23  ;;  %v5029_v34 = vmul.f32 -1.442695, %v2353_v33 }
 0x9e5   : > { %v2623_v43 = vpop.f32.mrb[24].mxu0 }
 0x9e6   : > { %5749 = vpow2.f32 %v5029_v34  ;;  %v5400_v44 = vpop.f32.mrb[25].mxu0 }
 0x9e9   : > { %v2770_v3 = vpop.f32.mrb[26].mxu0 }
 0x9ea   : > { %v5410_v6 = vpop.f32.mrb[27].mxu0 }
 0x9f0   : > { %v5750_v35 = vpop.eup %5749 }
 0x9f1   : > { %v2357_v36 = vadd.f32 1.0, %v5750_v35 }
 0x9f3   : > { %5751 = vrcp.f32 %v2357_v36 }
 0x9fd   : > { %v5752_v37 = vpop.eup %5751 }
 0x9fe   : > { %v2372_v45 = vsub.f32 1.0, %v5752_v37  ;;  %v2378_v47 = vmul.f32 %v5752_v37, %v6179_v50 }
 0xa06   : > { %v2054_v21 = vpop.permute.xlu0 %2053 }
 0xa07   : > { %v2056_v24 = vmul.f32 %v2054_v21, %v2051_v20 }
 0xa09   : > { %v6199_v25 = vadd.f32 %v2057_v22, %v2056_v24 }
 0xa0b   : > { %2454 = vrot.lane.b32.xlu0 %v6199_v25, %s5828_s26 }
 0xa56   : > { %v2363_v38 = vpop.permute.xlu1 %2362 }
 0xa57   : > { %v2365_v27 = vmul.f32 %v5752_v37, %v2363_v38 }
 0xa59   : > { %2367 = vrot.lane.b32.xlu1 %v2365_v27, %s5825_s23  ;;  %v5044_v27 = vld [vmem:[%s5942_s29 + $0x28] sm:$0xff] }
 0xa7d   : > { %v2455_v39 = vpop.permute.xlu0 %2454 }
 0xa7e   : > { %5394 = vmatmul.mubr.msk.f32.vlgmr.msra.gmra.mrb[22].mxu1 %vm886_vm4, %v2455_v39 }
 0xa7f   : > { %5402 = vmatpush3.msk.msra.mxu1 %vm614_vm0, %v5929_v1  ;;  %5403 = vmatprep.mubr.msk.f32.mxu1 %vm5823_vm1, %v5822_v0 }
 0xa80   : > { %5637 = vmatprep.subr.bf16.mxu1 %v5824_v4 }
 0xa82   : > { %5404 = vmatmul.mubr.msk.f32.vlgmr.msra.gmra.mrb[24].mxu1 %vm610_vm3, %v2623_v43 }
 0xa83   : > { %5639 = vmatpush3.bf16.msra.mxu1 %v5977_v9  ;;  %5419 = vmatprep.mubr.msk.f32.mxu1 %vm5823_vm1, %v5822_v0 }
 0xa84   : > { %5640 = vmatprep.subr.bf16.mxu1 %v5824_v4 }
 0xa87   : > { %5642 = vmatpush3.bf16.msra.mxu1 %v5987_v14 }
 0xa88   : > { %5436 = vmatprep.subr.mxu1 %v5822_v0 }
 0xacb   : > { %v2368_v40 = vpop.permute.xlu1 %2367 }
 0xacc   : > { %v2370_v41 = vadd.f32 %v2368_v40, %v2275_v32  ;;  %v2771_v32 = vadd.f32 %v6033_v30, %v2770_v3 }
 0xace   : > { %5753 = vtanh.f32 %v2370_v41 }
 0xad8   : > { %v5754_v42 = vpop.eup %5753 }
 0xad9   : > { %2374 = vrot.lane.b32.xlu1 %v5754_v42, %s5826_s17 }
 0xb4b   : > { %v2375_v46 = vpop.permute.xlu1 %2374 }
 0xb4c   : > { %v2377_v48 = vmul.f32 %v2375_v46, %v2372_v45 }
 0xb4e   : > { %v6234_v49 = vadd.f32 %v2378_v47, %v2377_v48 }
 0xb50   : > { %2775 = vrot.lane.b32.xlu1 %v6234_v49, %s5826_s17 }
 0xb51   : > { %v2524_v52 = vpop.f32.mrb[22].mxu1 }
 0xb52   : > { %v2535_v53 = vadd.f32 %v2524_v52, %v6065_v55  ;;  %v5395_v56 = vpop.f32.mrb[23].mxu1  ;;  %v2528_v59 = vadd.f32 %v2524_v52, %v2450_v58 }
 0xb54   : > { %2537 = vrot.lane.b32.xlu0 %v2535_v53, %s5826_s17  ;;  %v5032_v60 = vmul.f32 -1.442695, %v2528_v59 }
 0xb55   : > { %v2696_v7 = vpop.f32.mrb[24].mxu1 }
 0xb56   : > { %5755 = vpow2.f32 %v5032_v60  ;;  %v2700_v8 = vmax.f32 %v2696_v7, 0.0  ;;  %v5405_v10 = vpop.f32.mrb[25].mxu1 }
 0xb58   : > { %5427 = vmatmul.mubr.msk.f32.vlgmr.msra.gmra.mrb[28].mxu0 %vm886_vm4, %v2700_v8 }
 0xb59   : > { %5648 = vmatpush3.bf16.msra.mxu0 %v6013_v23  ;;  %5433 = vmatprep.mubr.msk.f32.mxu0 %vm5823_vm1, %v5822_v0 }
 0xb5a   : > { %5441 = vmatprep.subr.mxu0 %v5822_v0 }
 0xb60   : > { %v5756_v61 = vpop.eup %5755 }
 0xb61   : > { %v2532_v62 = vadd.f32 1.0, %v5756_v61 }
 0xb63   : > { %5757 = vrcp.f32 %v2532_v62 }
 0xb6d   : > { %v5758_v51 = vpop.eup %5757 }
 0xb6e   : > { %v2547_v19 = vsub.f32 1.0, %v5758_v51  ;;  %v2553_v21 = vmul.f32 %v5758_v51, %v6199_v25 }
 0xbc2   : > { %v2776_v50 = vpop.permute.xlu1 %2775 }
 0xbc3   : > { %5420 = vmatmul.mubr.msk.f32.vlgmr.msra.gmra.mrb[26].mxu1 %vm771_vm5, %v2776_v50 }
 0xbc4   : > { %5438 = vmatprep.mubr.msk.f32.mxu1 %vm5823_vm1, %v5822_v0  ;;  %5437 = vmatpush3.msra.mxu1 %v5044_v27 }
 0xbc5   : > { %5446 = vmatprep.subr.mxu1 %v5822_v0 }
 0xbc6   : > { %v2538_v54 = vpop.permute.xlu0 %2537 }
 0xbc7   : > { %v2540_v63 = vmul.f32 %v5758_v51, %v2538_v54  ;;  %5439 = vmatmul.mubr.msk.f32.vlgmr.msra.gmra.mrb[28].mxu1 %vm536_vm2, %v5947_v2 }
 0xbc8   : > { %5447 = vmatpush3.msk.msra.mxu1 %vm614_vm0, %v5959_v5  ;;  %5448 = vmatprep.mubr.msk.f32.mxu1 %vm5823_vm1, %v5822_v0 }
 0xbc9   : > { %2542 = vrot.lane.b32.xlu0 %v2540_v63, %s5827_s20  ;;  %5655 = vmatprep.subr.bf16.mxu1 %v5824_v4 }
 0xbcb   : > { %5449 = vmatmul.mubr.msk.f32.vlgmr.msra.gmra.mrb[30].mxu1 %vm610_vm3, %v5044_v27 }
 0xbcc   : > { %5657 = vmatpush3.bf16.msra.mxu1 %v6003_v17  ;;  %5466 = vmatprep.mubr.msk.f32.mxu1 %vm5823_vm1, %v5822_v0 }
 0xbcd   : > { %5658 = vmatprep.subr.bf16.mxu1 %v5824_v4 }
 0xc2b   : > { %v2945_v29 = vpop.f32.mrb[28].mxu0 }
 0xc2c   : > { %v5428_v31 = vpop.f32.mrb[29].mxu0  ;;  %v2946_v52 = vadd.f32 %v6074_v57, %v2945_v29 }
 0xc3b   : > { %v2543_v11 = vpop.permute.xlu0 %2542 }
 0xc3c   : > { %v2545_v12 = vadd.f32 %v2543_v11, %v2450_v58 }
 0xc3e   : > { %5759 = vtanh.f32 %v2545_v12 }
 0xc48   : > { %v5760_v13 = vpop.eup %5759 }
 0xc49   : > { %2549 = vrot.lane.b32.xlu0 %v5760_v13, %s5828_s26 }
 0xc96   : > { %v2845_v15 = vpop.f32.mrb[26].mxu1 }
 0xc97   : > { %v2856_v16 = vadd.f32 %v2845_v15, %v6020_v26  ;;  %v5421_v18 = vpop.f32.mrb[27].mxu1  ;;  %v2849_v33 = vadd.f32 %v2845_v15, %v2771_v32 }
 0xc99   : > { %2858 = vrot.lane.b32.xlu1 %v2856_v16, %s5825_s23  ;;  %v5040_v34 = vmul.f32 -1.442695, %v2849_v33 }
 0xc9a   : > { %v3119_v40 = vpop.f32.mrb[28].mxu1 }
 0xc9b   : > { %5761 = vpow2.f32 %v5040_v34  ;;  %v5440_v41 = vpop.f32.mrb[29].mxu1 }
 0xc9e   : > { %v3266_v50 = vpop.f32.mrb[30].mxu1 }
 0xc9f   : > { %v5450_v51 = vpop.f32.mrb[31].mxu1 }
 0xca5   : > { %v5762_v35 = vpop.eup %5761 }
 0xca6   : > { %v2853_v36 = vadd.f32 1.0, %v5762_v35 }
 0xca8   : > { %5763 = vrcp.f32 %v2853_v36  ;;  %v5055_v36 = vld [vmem:[%s5942_s29 + $0x30] sm:$0xff] }
 0xcb2   : > { %v5764_v37 = vpop.eup %5763 }
 0xcb3   : > { %v2874_v43 = vmul.f32 %v5764_v37, %v6234_v49 }
 0xcbb   : > { %v2550_v20 = vpop.permute.xlu0 %2549 }
 0xcbc   : > { %v2552_v22 = vmul.f32 %v2550_v20, %v2547_v19 }
 0xcbe   : > { %v6254_v24 = vadd.f32 %v2553_v21, %v2552_v22  ;;  %v3267_v22 = vadd.f32 %v6033_v30, %v3266_v50  ;;  %v6327_v30 = vld [vmem:[%s6515_s2] sm:$0xf] }
 0xcc0   : > { %2950 = vrot.lane.b32.xlu0 %v6254_v24, %s5828_s26 }
 0xd0b   : > { %v2859_v38 = vpop.permute.xlu1 %2858 }
 0xd0c   : > { %v2861_v25 = vmul.f32 %v5764_v37, %v2859_v38 }
 0xd0e   : > { %2863 = vrot.lane.b32.xlu1 %v2861_v25, %s5825_s23  ;;  %v6343_v25 = vld [vmem:[%s6524_s11] sm:$0xf] }
 0xd32   : > { %v2951_v2 = vpop.permute.xlu0 %2950 }
 0xd33   : > { %5434 = vmatmul.mubr.msk.f32.vlgmr.msra.gmra.mrb[30].mxu0 %vm886_vm4, %v2951_v2 }
 0xd34   : > { %5442 = vmatpush3.msk.msra.mxu0 %vm614_vm0, %v5929_v1  ;;  %5443 = vmatprep.mubr.msk.f32.mxu0 %vm5823_vm1, %v5822_v0  ;;  %v2868_v1 = vsub.f32 1.0, %v5764_v37  ;;  %v6319_v37 = vld [vmem:[%s6514_s1] sm:$0xff] }
 0xd35   : > { %5649 = vmatprep.subr.bf16.mxu0 %v5824_v4 }
 0xd37   : > { %5444 = vmatmul.mubr.msk.f32.vlgmr.msra.gmra.mrb[32].mxu0 %vm610_vm3, %v3119_v40 }
 0xd38   : > { %5651 = vmatpush3.bf16.msra.mxu0 %v5977_v9  ;;  %5459 = vmatprep.mubr.msk.f32.mxu0 %vm5823_vm1, %v5822_v0 }
 0xd39   : > { %5652 = vmatprep.subr.bf16.mxu0 %v5824_v4 }
 0xd3c   : > { %5654 = vmatpush3.bf16.msra.mxu0 %v5987_v14 }
 0xd3d   : > { %5476 = vmatprep.subr.mxu0 %v5822_v0 }
 0xd80   : > { %v2864_v5 = vpop.permute.xlu1 %2863 }
 0xd81   : > { %v2866_v28 = vadd.f32 %v2864_v5, %v2771_v32 }
 0xd83   : > { %5765 = vtanh.f32 %v2866_v28 }
 0xd8d   : > { %v5766_v39 = vpop.eup %5765 }
 0xd8e   : > { %2870 = vrot.lane.b32.xlu1 %v5766_v39, %s5826_s17 }
 0xe00   : > { %v2871_v42 = vpop.permute.xlu1 %2870 }
 0xe01   : > { %v2873_v44 = vmul.f32 %v2871_v42, %v2868_v1 }
 0xe03   : > { %v6289_v45 = vadd.f32 %v2874_v43, %v2873_v44 }
 0xe05   : > { %3271 = vrot.lane.b32.xlu1 %v6289_v45, %s5826_s17 }
 0xe06   : > { %v3020_v46 = vpop.f32.mrb[30].mxu0 }
 0xe07   : > { %v3031_v47 = vadd.f32 %v3020_v46, %v6065_v55  ;;  %v5435_v48 = vpop.f32.mrb[31].mxu0  ;;  %v3024_v53 = vadd.f32 %v3020_v46, %v2946_v52 }
 0xe09   : > { %3033 = vrot.lane.b32.xlu0 %v3031_v47, %s5826_s17  ;;  %v5043_v56 = vmul.f32 -1.442695, %v3024_v53 }
 0xe0a   : > { %v3192_v54 = vpop.f32.mrb[32].mxu0 }
 0xe0b   : > { %5767 = vpow2.f32 %v5043_v56  ;;  %v3196_v63 = vmax.f32 %v3192_v54, 0.0  ;;  %v5445_v3 = vpop.f32.mrb[33].mxu0 }
 0xe0d   : > { %5467 = vmatmul.mubr.msk.f32.vlgmr.msra.gmra.mrb[32].mxu1 %vm886_vm4, %v3196_v63 }
 0xe0e   : > { %5660 = vmatpush3.bf16.msra.mxu1 %v6013_v23  ;;  %5473 = vmatprep.mubr.msk.f32.mxu1 %vm5823_vm1, %v5822_v0 }
 0xe0f   : > { %5481 = vmatprep.subr.mxu1 %v5822_v0 }
 0xe15   : > { %v5768_v58 = vpop.eup %5767 }
 0xe16   : > { %v3028_v59 = vadd.f32 1.0, %v5768_v58 }
 0xe18   : > { %5769 = vrcp.f32 %v3028_v59 }
 0xe22   : > { %v5770_v60 = vpop.eup %5769 }
 0xe23   : > { %v3043_v13 = vsub.f32 1.0, %v5770_v60  ;;  %v3049_v16 = vmul.f32 %v5770_v60, %v6254_v24 }
 0xe77   : > { %v3272_v49 = vpop.permute.xlu1 %3271 }
 0xe78   : > { %5460 = vmatmul.mubr.msk.f32.vlgmr.msra.gmra.mrb[34].mxu0 %vm771_vm5, %v3272_v49 }
 0xe79   : > { %5478 = vmatprep.mubr.msk.f32.mxu0 %vm5823_vm1, %v5822_v0  ;;  %5477 = vmatpush3.msra.mxu0 %v5055_v36 }
 0xe7a   : > { %5486 = vmatprep.subr.mxu0 %v5822_v0 }
 0xe7b   : > { %v3034_v61 = vpop.permute.xlu0 %3033 }
 0xe7c   : > { %v3036_v62 = vmul.f32 %v5770_v60, %v3034_v61  ;;  %5479 = vmatmul.mubr.msk.f32.vlgmr.msra.gmra.mrb[36].mxu0 %vm536_vm2, %v6319_v37 }
 0xe7d   : > { %5487 = vmatpush3.msk.msra.mxu0 %vm614_vm0, %v6327_v30  ;;  %5488 = vmatprep.mubr.msk.f32.mxu0 %vm5823_vm1, %v5822_v0 }
 0xe7e   : > { %3038 = vrot.lane.b32.xlu0 %v3036_v62, %s5827_s20  ;;  %5667 = vmatprep.subr.bf16.mxu0 %v5824_v4 }
 0xe80   : > { %5489 = vmatmul.mubr.msk.f32.vlgmr.msra.gmra.mrb[38].mxu0 %vm610_vm3, %v5055_v36 }
 0xe81   : > { %5669 = vmatpush3.bf16.msra.mxu0 %v6003_v17  ;;  %5506 = vmatprep.mubr.msk.f32.mxu0 %vm5823_vm1, %v5822_v0 }
 0xe82   : > { %5670 = vmatprep.subr.bf16.mxu0 %v5824_v4 }
 0xee0   : > { %v3441_v20 = vpop.f32.mrb[32].mxu1 }
 0xee1   : > { %v5468_v21 = vpop.f32.mrb[33].mxu1  ;;  %v3442_v48 = vadd.f32 %v6074_v57, %v3441_v20  ;;  %v6386_v20 = vld [vmem:[%s6517_s4] ss:$0 sm:$0xff] }
 0xef0   : > { %v3039_v6 = vpop.permute.xlu0 %3038 }
 0xef1   : > { %v3041_v7 = vadd.f32 %v3039_v6, %v2946_v52 }
 0xef3   : > { %5771 = vtanh.f32 %v3041_v7 }
 0xefd   : > { %v5772_v8 = vpop.eup %5771 }
 0xefe   : > { %3045 = vrot.lane.b32.xlu0 %v5772_v8, %s5828_s26 }
 0xf4b   : > { %v3341_v10 = vpop.f32.mrb[34].mxu0 }
 0xf4c   : > { %v3352_v11 = vadd.f32 %v3341_v10, %v6020_v26  ;;  %v5461_v12 = vpop.f32.mrb[35].mxu0  ;;  %v3345_v29 = vadd.f32 %v3341_v10, %v3267_v22 }
 0xf4e   : > { %3354 = vrot.lane.b32.xlu1 %v3352_v11, %s5825_s23  ;;  %v5051_v31 = vmul.f32 -1.442695, %v3345_v29 }
 0xf4f   : > { %v3615_v28 = vpop.f32.mrb[36].mxu0 }
 0xf50   : > { %5773 = vpow2.f32 %v5051_v31  ;;  %v5480_v39 = vpop.f32.mrb[37].mxu0 }
 0xf53   : > { %v3762_v61 = vpop.f32.mrb[38].mxu0 }
 0xf54   : > { %v5490_v62 = vpop.f32.mrb[39].mxu0  ;;  %v3763_v21 = vadd.f32 %v6386_v20, %v3762_v61 }
 0xf5a   : > { %v5774_v32 = vpop.eup %5773 }
 0xf5b   : > { %v3349_v33 = vadd.f32 1.0, %v5774_v32 }
 0xf5d   : > { %5775 = vrcp.f32 %v3349_v33 }
 0xf67   : > { %v5776_v34 = vpop.eup %5775 }
 0xf68   : > { %v3364_v40 = vsub.f32 1.0, %v5776_v34  ;;  %v3370_v1 = vmul.f32 %v5776_v34, %v6289_v45 }
 0xf70   : > { %v3046_v15 = vpop.permute.xlu0 %3045 }
 0xf71   : > { %v3048_v18 = vmul.f32 %v3046_v15, %v3043_v13 }
 0xf73   : > { %v6309_v19 = vadd.f32 %v3049_v16, %v3048_v18 }
 0xf75   : > { %3446 = vrot.lane.b32.xlu0 %v6309_v19, %s5828_s26 }
 0xfc0   : > { %v3355_v35 = vpop.permute.xlu1 %3354 }
 0xfc1   : > { %v3357_v24 = vmul.f32 %v5776_v34, %v3355_v35  ;;  %v5066_v35 = vld [vmem:[%s5942_s29 + $0x38] sm:$0xff] }
 0xfc3   : > { %3359 = vrot.lane.b32.xlu1 %v3357_v24, %s5825_s23 }
 0xfe7   : > { %v3447_v38 = vpop.permute.xlu0 %3446 }
 0xfe8   : > { %5474 = vmatmul.mubr.msk.f32.vlgmr.msra.gmra.mrb[34].mxu1 %vm886_vm4, %v3447_v38 }
 0xfe9   : > { %5482 = vmatpush3.msk.msra.mxu1 %vm614_vm0, %v6343_v25  ;;  %5483 = vmatprep.mubr.msk.f32.mxu1 %vm5823_vm1, %v5822_v0 }
 0xfea   : > { %5661 = vmatprep.subr.bf16.mxu1 %v5824_v4 }
 0xfec   : > { %5484 = vmatmul.mubr.msk.f32.vlgmr.msra.gmra.mrb[36].mxu1 %vm610_vm3, %v3615_v28 }
 0xfed   : > { %5663 = vmatpush3.bf16.msra.mxu1 %v5977_v9  ;;  %5499 = vmatprep.mubr.msk.f32.mxu1 %vm5823_vm1, %v5822_v0 }
 0xfee   : > { %5664 = vmatprep.subr.bf16.mxu1 %v5824_v4 }
 0xff1   : > { %5666 = vmatpush3.bf16.msra.mxu1 %v5987_v14 }
 0xff2   : > { %5516 = vmatprep.subr.mxu1 %v5822_v0 }
0x1035   : > { %v3360_v27 = vpop.permute.xlu1 %3359 }
0x1036   : > { %v3362_v2 = vadd.f32 %v3360_v27, %v3267_v22 }
0x1038   : > { %5777 = vtanh.f32 %v3362_v2 }
0x1042   : > { %v5778_v5 = vpop.eup %5777 }
0x1043   : > { %3366 = vrot.lane.b32.xlu1 %v5778_v5, %s5826_s17 }
0x10b5   : > { %v3367_v41 = vpop.permute.xlu1 %3366 }
0x10b6   : > { %v3369_v42 = vmul.f32 %v3367_v41, %v3364_v40 }
0x10b8   : > { %v6359_v43 = vadd.f32 %v3370_v1, %v3369_v42 }
0x10ba   : > { %3767 = vrot.lane.b32.xlu1 %v6359_v43, %s5826_s17 }
0x10bb   : > { %v3516_v44 = vpop.f32.mrb[34].mxu1 }
0x10bc   : > { %v3527_v46 = vadd.f32 %v3516_v44, %v6065_v55  ;;  %v5475_v47 = vpop.f32.mrb[35].mxu1  ;;  %v3520_v52 = vadd.f32 %v3516_v44, %v3442_v48 }
0x10be   : > { %3529 = vrot.lane.b32.xlu0 %v3527_v46, %s5826_s17  ;;  %v5054_v53 = vmul.f32 -1.442695, %v3520_v52 }
0x10bf   : > { %v3688_v57 = vpop.f32.mrb[36].mxu1 }
0x10c0   : > { %5779 = vpow2.f32 %v5054_v53  ;;  %v3692_v50 = vmax.f32 %v3688_v57, 0.0  ;;  %v5485_v51 = vpop.f32.mrb[37].mxu1 }
0x10c2   : > { %5507 = vmatmul.mubr.msk.f32.vlgmr.msra.gmra.mrb[40].mxu0 %vm886_vm4, %v3692_v50 }
0x10c3   : > { %5672 = vmatpush3.bf16.msra.mxu0 %v6013_v23  ;;  %5513 = vmatprep.mubr.msk.f32.mxu0 %vm5823_vm1, %v5822_v0 }
0x10c4   : > { %5521 = vmatprep.subr.mxu0 %v5822_v0 }
0x10ca   : > { %v5780_v56 = vpop.eup %5779 }
0x10cb   : > { %v3524_v58 = vadd.f32 1.0, %v5780_v56 }
0x10cd   : > { %5781 = vrcp.f32 %v3524_v58 }
0x10d7   : > { %v5782_v59 = vpop.eup %5781 }
0x10d8   : > { %v3539_v10 = vsub.f32 1.0, %v5782_v59  ;;  %v3545_v12 = vmul.f32 %v5782_v59, %v6309_v19 }
0x112c   : > { %v3768_v45 = vpop.permute.xlu1 %3767 }
0x112d   : > { %5500 = vmatmul.mubr.msk.f32.vlgmr.msra.gmra.mrb[38].mxu1 %vm771_vm5, %v3768_v45 }
0x112e   : > { %5518 = vmatprep.mubr.msk.f32.mxu1 %vm5823_vm1, %v5822_v0  ;;  %5517 = vmatpush3.msra.mxu1 %v5066_v35 }
0x112f   : > { %5526 = vmatprep.subr.mxu1 %v5822_v0 }
0x1130   : > { %v3530_v49 = vpop.permute.xlu0 %3529 }
0x1131   : > { %v3532_v60 = vmul.f32 %v5782_v59, %v3530_v49  ;;  %5519 = vmatmul.mubr.msk.f32.vlgmr.msra.gmra.mrb[40].mxu1 %vm536_vm2, %v6319_v37 }
0x1132   : > { %5527 = vmatpush3.msk.msra.mxu1 %vm614_vm0, %v6327_v30  ;;  %5528 = vmatprep.mubr.msk.f32.mxu1 %vm5823_vm1, %v5822_v0 }
0x1133   : > { %3534 = vrot.lane.b32.xlu0 %v3532_v60, %s5827_s20  ;;  %5679 = vmatprep.subr.bf16.mxu1 %v5824_v4 }
0x1135   : > { %5529 = vmatmul.mubr.msk.f32.vlgmr.msra.gmra.mrb[42].mxu1 %vm610_vm3, %v5066_v35 }
0x1136   : > { %5681 = vmatpush3.bf16.msra.mxu1 %v6003_v17  ;;  %5546 = vmatprep.mubr.msk.f32.mxu1 %vm5823_vm1, %v5822_v0 }
0x1137   : > { %5682 = vmatprep.subr.bf16.mxu1 %v5824_v4 }
0x1195   : > { %v3937_v16 = vpop.f32.mrb[40].mxu0 }
0x1196   : > { %v5508_v18 = vpop.f32.mrb[41].mxu0 }
0x11a5   : > { %v3535_v54 = vpop.permute.xlu0 %3534 }
0x11a6   : > { %v3537_v63 = vadd.f32 %v3535_v54, %v3442_v48 }
0x11a8   : > { %5783 = vtanh.f32 %v3537_v63 }
0x11b2   : > { %v5784_v3 = vpop.eup %5783 }
0x11b3   : > { %3541 = vrot.lane.b32.xlu0 %v5784_v3, %s5828_s26 }
0x1200   : > { %v3837_v6 = vpop.f32.mrb[38].mxu1 }
0x1201   : > { %v3848_v7 = vadd.f32 %v3837_v6, %v6020_v26  ;;  %v5501_v8 = vpop.f32.mrb[39].mxu1  ;;  %v3841_v22 = vadd.f32 %v3837_v6, %v3763_v21 }
0x1203   : > { %3850 = vrot.lane.b32.xlu1 %v3848_v7, %s5825_s23  ;;  %v5062_v29 = vmul.f32 -1.442695, %v3841_v22 }
0x1204   : > { %v4111_v38 = vpop.f32.mrb[40].mxu1 }
0x1205   : > { %5785 = vpow2.f32 %v5062_v29  ;;  %v5520_v27 = vpop.f32.mrb[41].mxu1 }
0x1208   : > { %v4258_v56 = vpop.f32.mrb[42].mxu1 }
0x1209   : > { %v5530_v58 = vpop.f32.mrb[43].mxu1 }
0x120a   : > { %v4690_v58 = vld [vmem:[%s6525_s12 + $0x8] sm:$0xff] }
0x120f   : > { %v5786_v19 = vpop.eup %5785 }
0x1210   : > { %v3845_v31 = vadd.f32 1.0, %v5786_v19 }
0x1212   : > { %5787 = vrcp.f32 %v3845_v31 }
0x121c   : > { %v5788_v32 = vpop.eup %5787 }
0x121d   : > { %v3866_v5 = vmul.f32 %v5788_v32, %v6359_v43 }
0x1225   : > { %v3542_v11 = vpop.permute.xlu0 %3541 }
0x1226   : > { %v3544_v13 = vmul.f32 %v3542_v11, %v3539_v10  ;;  %v4259_v10 = vadd.f32 %v6386_v20, %v4258_v56 }
0x1228   : > { %v6379_v15 = vadd.f32 %v3545_v12, %v3544_v13 }
0x122a   : > { %3942 = vrot.lane.b32.xlu0 %v6379_v15, %s5828_s26 }
0x1275   : > { %v3851_v33 = vpop.permute.xlu1 %3850 }
0x1276   : > { %v3853_v34 = vmul.f32 %v5788_v32, %v3851_v33 }
0x1278   : > { %3855 = vrot.lane.b32.xlu1 %v3853_v34, %s5825_s23 }
0x129c   : > { %v3943_v24 = vpop.permute.xlu0 %3942 }
0x129d   : > { %5514 = vmatmul.mubr.msk.f32.vlgmr.msra.gmra.mrb[42].mxu0 %vm886_vm4, %v3943_v24 }
0x129e   : > { %5522 = vmatpush3.msk.msra.mxu0 %vm614_vm0, %v6343_v25  ;;  %5523 = vmatprep.mubr.msk.f32.mxu0 %vm5823_vm1, %v5822_v0  ;;  %v3860_v25 = vsub.f32 1.0, %v5788_v32 }
0x129f   : > { %5673 = vmatprep.subr.bf16.mxu0 %v5824_v4 }
0x12a1   : > { %5524 = vmatmul.mubr.msk.f32.vlgmr.msra.gmra.mrb[44].mxu0 %vm610_vm3, %v4111_v38 }
0x12a2   : > { %5675 = vmatpush3.bf16.msra.mxu0 %v5977_v9  ;;  %5539 = vmatprep.mubr.msk.f32.mxu0 %vm5823_vm1, %v5822_v0 }
0x12a3   : > { %5676 = vmatprep.subr.bf16.mxu0 %v5824_v4 }
0x12a6   : > { %5678 = vmatpush3.bf16.msra.mxu0 %v5987_v14  ;;  %v6428_v14 = vld [vmem:[%s6521_s8] ss:$0 sm:$0xff] }
0x12a7   : > { %5556 = vmatprep.subr.mxu0 %v5822_v0  ;;  %v3938_v1 = vadd.f32 %v6428_v14, %v3937_v16 }
0x12ea   : > { %v3856_v36 = vpop.permute.xlu1 %3855 }
0x12eb   : > { %v3858_v30 = vadd.f32 %v3856_v36, %v3763_v21 }
0x12ed   : > { %5789 = vtanh.f32 %v3858_v30 }
0x12f7   : > { %v5790_v17 = vpop.eup %5789 }
0x12f8   : > { %3862 = vrot.lane.b32.xlu1 %v5790_v17, %s5826_s17 }
0x136a   : > { %v3863_v2 = vpop.permute.xlu1 %3862 }
0x136b   : > { %v3865_v28 = vmul.f32 %v3863_v2, %v3860_v25 }
0x136d   : > { %v6419_v39 = vadd.f32 %v3866_v5, %v3865_v28 }
0x136f   : > { %4263 = vrot.lane.b32.xlu1 %v6419_v39, %s5826_s17 }
0x1370   : > { %v4012_v9 = vpop.f32.mrb[42].mxu0 }
0x1371   : > { %v4023_v40 = vadd.f32 %v4012_v9, %v6065_v55  ;;  %v5515_v41 = vpop.f32.mrb[43].mxu0  ;;  %v4016_v42 = vadd.f32 %v4012_v9, %v3938_v1  ;;  %v4614_v9 = vld [vmem:[%s6523_s10 + $0x8] sm:$0xff] }
0x1373   : > { %4025 = vrot.lane.b32.xlu0 %v4023_v40, %s5826_s17  ;;  %v5065_v43 = vmul.f32 -1.442695, %v4016_v42 }
0x1374   : > { %v4184_v45 = vpop.f32.mrb[44].mxu0 }
0x1375   : > { %5791 = vpow2.f32 %v5065_v43  ;;  %v4188_v59 = vmax.f32 %v4184_v45, 0.0  ;;  %v5525_v49 = vpop.f32.mrb[45].mxu0 }
0x1376   : > { %v4842_v49 = vld [vmem:[%s6527_s14 + $0x8] sm:$0xff] }
0x1377   : > { %5547 = vmatmul.mubr.msk.f32.vlgmr.msra.gmra.mrb[44].mxu1 %vm886_vm4, %v4188_v59  ;;  %v4841_v59 = vld [vmem:[%s6527_s14] sm:$0xff] }
0x1378   : > { %5684 = vmatpush3.bf16.msra.mxu1 %v6013_v23  ;;  %5553 = vmatprep.mubr.msk.f32.mxu1 %vm5823_vm1, %v5822_v0 }
0x1379   : > { %5685 = vmatprep.subr.bf16.mxu1 %v5824_v4 }
0x137f   : > { %v5792_v44 = vpop.eup %5791 }
0x1380   : > { %v4020_v46 = vadd.f32 1.0, %v5792_v44 }
0x1382   : > { %5793 = vrcp.f32 %v4020_v46 }
0x138c   : > { %v5794_v48 = vpop.eup %5793 }
0x138d   : > { %v4035_v54 = vsub.f32 1.0, %v5794_v48  ;;  %v4041_v23 = vmul.f32 %v5794_v48, %v6379_v15 }
0x13e1   : > { %v4264_v47 = vpop.permute.xlu1 %4263 }
0x13e2   : > { %5540 = vmatmul.mubr.msk.f32.vlgmr.msra.gmra.mrb[46].mxu0 %vm771_vm5, %v4264_v47 }
0x13e3   : > { %5558 = vmatprep.mubr.msk.f32.mxu0 %vm5823_vm1, %v5822_v0 }
0x13e5   : > { %v4026_v52 = vpop.permute.xlu0 %4025 }
0x13e6   : > { %v4028_v53 = vmul.f32 %v5794_v48, %v4026_v52 }
0x13e8   : > { %4030 = vrot.lane.b32.xlu0 %v4028_v53, %s5827_s20 }
0x144a   : > { %v4433_v7 = vpop.f32.mrb[44].mxu1 }
0x144b   : > { %v5548_v8 = vpop.f32.mrb[45].mxu1  ;;  %v4434_v30 = vadd.f32 %v6428_v14, %v4433_v7  ;;  %v4691_v14 = vld [vmem:[%s6526_s13] sm:$0xff] }
0x145a   : > { %v4031_v60 = vpop.permute.xlu0 %4030 }
0x145b   : > { %v4033_v61 = vadd.f32 %v4031_v60, %v3938_v1  ;;  %v4692_v1 = vld [vmem:[%s6526_s13 + $0x8] sm:$0xff]  ;;  %v5695_v60 = vpack.c.bf16 %v4842_v49, %v4841_v59 }
0x145c   : > { %v5689_v42 = vpack.c.bf16 %v4692_v1, %v4691_v14 }
0x145d   : > { %5795 = vtanh.f32 %v4033_v61 }
0x1467   : > { %v5796_v62 = vpop.eup %5795 }
0x1468   : > { %4037 = vrot.lane.b32.xlu0 %v5796_v62, %s5828_s26 }
0x14b5   : > { %v4333_v57 = vpop.f32.mrb[46].mxu0 }
0x14b6   : > { %v4344_v50 = vadd.f32 %v4333_v57, %v6020_v26  ;;  %v5541_v51 = vpop.f32.mrb[47].mxu0  ;;  %v4337_v11 = vadd.f32 %v4333_v57, %v4259_v10 }
0x14b8   : > { %4346 = vrot.lane.b32.xlu1 %v4344_v50, %s5825_s23  ;;  %v5073_v12 = vmul.f32 -1.442695, %v4337_v11 }
0x14ba   : > { %5797 = vpow2.f32 %v5073_v12 }
0x14c4   : > { %v5798_v26 = vpop.eup %5797 }
0x14c5   : > { %v4341_v13 = vadd.f32 1.0, %v5798_v26 }
0x14c7   : > { %5799 = vrcp.f32 %v4341_v13 }
0x14d1   : > { %v5800_v16 = vpop.eup %5799 }
0x14d2   : > { %v4356_v19 = vsub.f32 1.0, %v5800_v16  ;;  %v4362_v32 = vmul.f32 %v5800_v16, %v6419_v39  ;;  %v4613_v39 = vld [vmem:[%s6523_s10] sm:$0xff] }
0x14d3   : > { %v5686_v40 = vpack.c.bf16 %v4614_v9, %v4613_v39 }
0x14da   : > { %v4038_v63 = vpop.permute.xlu0 %4037 }
0x14db   : > { %v4040_v3 = vmul.f32 %v4038_v63, %v4035_v54 }
0x14dd   : > { %v6444_v6 = vadd.f32 %v4041_v23, %v4040_v3 }
0x14df   : > { %4438 = vrot.lane.b32.xlu0 %v6444_v6, %s5828_s26 }
0x152a   : > { %v4347_v18 = vpop.permute.xlu1 %4346 }
0x152b   : > { %v4349_v21 = vmul.f32 %v5800_v16, %v4347_v18 }
0x152d   : > { %4351 = vrot.lane.b32.xlu1 %v4349_v21, %s5825_s23 }
0x1551   : > { %v4439_v15 = vpop.permute.xlu0 %4438 }
0x1552   : > { %5554 = vmatmul.mubr.msk.f32.vlgmr.msra.gmra.mrb[46].mxu1 %vm886_vm4, %v4439_v15 }
0x1553   : > { %5565 = vmatprep.mubr.msk.f32.mxu1 %vm5823_vm1, %v5822_v0  ;;  %5687 = vmatpush3.bf16.msra.mxu1 %v5686_v40 }
0x1554   : > { %5691 = vmatprep.subr.bf16.mxu1 %v5824_v4 }
0x159f   : > { %v4352_v22 = vpop.permute.xlu1 %4351 }
0x15a0   : > { %v4354_v29 = vadd.f32 %v4352_v22, %v4259_v10 }
0x15a2   : > { %5801 = vtanh.f32 %v4354_v29 }
0x15ac   : > { %v5802_v20 = vpop.eup %5801 }
0x15ad   : > { %4358 = vrot.lane.b32.xlu1 %v5802_v20, %s5826_s17 }
0x161f   : > { %v4359_v31 = vpop.permute.xlu1 %4358 }
0x1620   : > { %v4361_v33 = vmul.f32 %v4359_v31, %v4356_v19 }
0x1622   : > { %v4363_v34 = vadd.f32 %v4362_v32, %v4361_v33 }
0x1624   : > { %4540 = vrot.lane.b32.xlu1 %v4363_v34, %s5826_s17 }
0x1625   : > { %v4508_v35 = vpop.f32.mrb[46].mxu1 }
0x1626   : > { %v4519_v24 = vadd.f32 %v4508_v35, %v6065_v55  ;;  %v5555_v36 = vpop.f32.mrb[47].mxu1  ;;  %v4512_v17 = vadd.f32 %v4508_v35, %v4434_v30 }
0x1628   : > { %4521 = vrot.lane.b32.xlu0 %v4519_v24, %s5826_s17  ;;  %v5076_v38 = vmul.f32 -1.442695, %v4512_v17 }
0x162a   : > { %5803 = vpow2.f32 %v5076_v38 }
0x1634   : > { %v5804_v27 = vpop.eup %5803 }
0x1635   : > { %v4516_v25 = vadd.f32 1.0, %v5804_v27 }
0x1637   : > { %5805 = vrcp.f32 %v4516_v25 }
0x1641   : > { %v5806_v55 = vpop.eup %5805 }
0x1642   : > { %v4531_v47 = vsub.f32 1.0, %v5806_v55  ;;  %v4537_v52 = vmul.f32 %v5806_v55, %v6444_v6 }
0x1696   : > { %v4541_v2 = vpop.permute.xlu1 %4540 }
0x1697   : > { %5557 = vmatpush3.msra.mxu0 %v4541_v2 }
0x1698   : > { %5559 = vmatmul.mubr.msk.f32.vlgmr.msra.gmra.mrb[48].mxu0 %vm536_vm2, %v6319_v37  ;;  %5688 = vmatprep.subr.bf16.mxu0 %v5824_v4 }
0x1699   : > { %5572 = vmatprep.mubr.msk.f32.mxu0 %vm5823_vm1, %v5822_v0  ;;  %5690 = vmatpush3.bf16.msra.mxu0 %v5689_v42 }
0x169a   : > { %v4522_v5 = vpop.permute.xlu0 %4521  ;;  %5694 = vmatprep.subr.bf16.mxu0 %v5824_v4  ;;  %v4689_v4 = vld [vmem:[%s6525_s12] sm:$0xff] }
0x169b   : > { %v4524_v28 = vmul.f32 %v5806_v55, %v4522_v5  ;;  %v5692_v45 = vpack.c.bf16 %v4690_v58, %v4689_v4 }
0x169d   : > { %4526 = vrot.lane.b32.xlu1 %v4524_v28, %s5827_s20 }
0x170f   : > { %v4527_v37 = vpop.permute.xlu1 %4526 }
0x1710   : > { %v4529_v41 = vadd.f32 %v4527_v37, %v4434_v30 }
0x1712   : > { %5807 = vtanh.f32 %v4529_v41 }
0x171c   : > { %v5808_v43 = vpop.eup %5807 }
0x171d   : > { %4533 = vrot.lane.b32.xlu0 %v5808_v43, %s5828_s26 }
0x1721   : > { %4843 = vrot.lane.b32.xlu0 %v4363_v34, %s5829_s24 }
0x176b   : > { %v4609_v44 = vpop.f32.mrb[48].mxu0 }
0x176c   : > { %5566 = vmatmul.mubr.msk.f32.vlgmr.msra.gmra.mrb[48].mxu1 %vm886_vm4, %v4609_v44  ;;  %v5560_v46 = vpop.f32.mrb[49].mxu0 }
0x176d   : > { %5579 = vmatprep.mubr.msk.f32.mxu1 %vm5823_vm1, %v5822_v0  ;;  %5693 = vmatpush3.bf16.msra.mxu1 %v5692_v45 }
0x178f   : > { %v4534_v48 = vpop.permute.xlu0 %4533 }
0x1790   : > { %v4536_v53 = vmul.f32 %v4534_v48, %v4531_v47 }
0x1792   : > { %v4538_v56 = vadd.f32 %v4537_v52, %v4536_v53 }
0x1793   : > { %v4844_v62 = vpop.permute.xlu0 %4843 }
0x1794   : > { %4694 = vrot.lane.b32.xlu1 %v4538_v56, %s5828_s26  ;;  %s4987_s26 = sshll.u32 %s6533_s22, 3 }
0x1795   : > { %s519_s25 = scalar_lea.vmem %s6529_s16, %s4987_s26 }
0x1806   : > { %v4695_v61 = vpop.permute.xlu1 %4694 }
0x1807   : > { %5573 = vmatmul.mubr.msk.f32.vlgmr.msra.gmra.mrb[50].mxu0 %vm886_vm4, %v4695_v61 }
0x1808   : > { %5696 = vmatpush3.bf16.msra.mxu0 %v5695_v60  ;;  %5586 = vmatprep.mubr.msk.f32.mxu0 %vm5823_vm1, %v5822_v0  ;;  %v5082_v0 = vld [vmem:[%s6528_s15] ss:$0 sm:$0xff] }
0x180b   : > { %5587 = vmatmul.mubr.msk.f32.vlgmr.msra.gmra.mrb[52].mxu0 %vm886_vm4, %v4844_v62 }
0x183f   : > { %v4684_v57 = vpop.f32.mrb[48].mxu1 }
0x1840   : > { %v4688_v50 = vmax.f32 %v4684_v57, 0.0  ;;  %v5567_v51 = vpop.f32.mrb[49].mxu1 }
0x1842   : > { %5580 = vmatmul.mubr.msk.f32.vlgmr.msra.gmra.mrb[50].mxu1 %vm886_vm4, %v4688_v50 }
0x18da   : > { %v4764_v54 = vpop.f32.mrb[50].mxu0 }
0x18db   : > { %v5574_v63 = vpop.f32.mrb[51].mxu0 }
0x18de   : > { %v4913_v23 = vpop.f32.mrb[52].mxu0 }
0x18df   : > { %v5588_v3 = vpop.f32.mrb[53].mxu0 }
0x1915   : > { %v4837_v6 = vpop.f32.mrb[50].mxu1 }
0x1916   : > { %v4838_v7 = vadd.f32 %v4837_v6, %v4764_v54  ;;  %v5581_v8 = vpop.f32.mrb[51].mxu1 }
0x1918   : > { %v4917_v10 = vadd.f32 %v4913_v23, %v4838_v7 }
0x191a   : > { %v4925_v11 = vadd.f32 %v5082_v0, %v4917_v10 }
0x191c   : > { %4926 = vst.msk [vmem:[%s519_s25] sm:$0xff] %vm886_vm4, %v4925_v11 }
0x191d PF: > { %s26_s21 = sadd.s32 1, %s5820_s21  }
0x191e   : > { %p23_p4 = scmp.ge.s32.totalorder %s26_s21, 4  }
0x1920   :  { %25 = sbr.rel (!%p23_p4) target bundleno = 2 (0x2), region = 121 }

</bundles_post_ra>
